<compile_context>
chip_gen: v7x
topology: tpu7x:2x2x1
jax: 0.10.0
libtpu: 0.0.40
codegen_flags: <defaults>
</compile_context>

<pallas_src>
import functools

import numpy as np

import jax
import jax.numpy as jnp
from jax.experimental import pallas as pl
from jax.experimental.pallas import tpu as pltpu


OUT_PAD = 128      # lane-dense output width: lane 0 = value, lanes 1..A = probs
HEAD_DIM = 512     # per-head hidden width (critic / actor)

# Lane offsets of the individual bias vectors inside the fused bias operand.
# Every segment starts on a 128-lane boundary so the in-kernel slices are clean.
_B1_OFF, _B2_OFF, _B3_OFF, _BH1_OFF, _BH2_OFF = 0, 128, 256, 384, 1408
_B_ALL_W = 1536


def _tree_sum(parts):
    """Pairwise-tree sum of a list of arrays (shortens the VPU add chain)."""
    parts = list(parts)
    while len(parts) > 1:
        nxt = [parts[i] + parts[i + 1] for i in range(0, len(parts) - 1, 2)]
        if len(parts) % 2:
            nxt.append(parts[-1])
        parts = nxt
    return parts[0]


# ----------------------------- fused Pallas kernel ---------------------------
def _a2c_fused_kernel(p1_ref, w1_ref, g2_ref, w2_ref, g3_ref, w3_ref,
                      wh1_ref, wh2_ref, b_ref, o_ref, *, action_space):
    """Whole A2C forward in one kernel; every operand lives in VMEM.

    p1  : (N*64, 64)      bf16  conv1 im2col patches (k=8, s=4, C=1)
    w1  : (64, 32)        bf16  conv1 weight (K, OC)
    g2  : (16, N*9, N*64) bf16  0/1 row-gather matrix per conv2 kernel tap
    w2  : (32, 1024)      bf16  conv2 taps concatenated along output lanes
    g3  : (9, N, N*9)     bf16  0/1 row-gather matrix per conv3 kernel tap
    w3  : (64, 576)       bf16  conv3 taps concatenated along output lanes
    wh1 : (64, 1024)      bf16  fused critic‖actor hidden layer
    wh2 : (512, 128)      bf16  shared head-out weight: lane 0 = value,
                                lanes 1..A = action logits
    b   : (1, 1536)       f32   all biases, in 128-lane-aligned segments
    out : (N, 128)        f32   lane 0 = value, lanes 1..A = softmax probs
    """
    f32 = jnp.float32
    bf16 = jnp.bfloat16

    def mm(a, b):
        return jnp.dot(a, b, preferred_element_type=f32)

    b1 = b_ref[:, _B1_OFF:_B1_OFF + 32]
    b2 = b_ref[:, _B2_OFF:_B2_OFF + 64]
    b3 = b_ref[:, _B3_OFF:_B3_OFF + 64]
    bh1 = b_ref[:, _BH1_OFF:_BH1_OFF + 2 * HEAD_DIM]
    bh2 = b_ref[:, _BH2_OFF:_BH2_OFF + OUT_PAD]

    # conv1 + ReLU --------------------------------------------------- (N*64, 32)
    h1 = jnp.maximum(mm(p1_ref[...], w1_ref[...]) + b1, 0.0)

    # conv2 + ReLU: one wide matmul over all 16 taps, then 16 row-gather
    # matmuls on static 64-lane slices, tree-accumulated. ------------- (N*9, 64)
    y2 = mm(h1.astype(bf16), w2_ref[...]).astype(bf16)          # (N*64, 16*64)
    acc2 = _tree_sum([mm(g2_ref[g], y2[:, g * 64:(g + 1) * 64])
                      for g in range(g2_ref.shape[0])])
    h2 = jnp.maximum(acc2 + b2, 0.0)

    # conv3 + ReLU: 3x3 input -> 1x1 output, same trick ------------------ (N, 64)
    y3 = mm(h2.astype(bf16), w3_ref[...]).astype(bf16)          # (N*9, 9*64)
    acc3 = _tree_sum([mm(g3_ref[p], y3[:, p * 64:(p + 1) * 64])
                      for p in range(g3_ref.shape[0])])
    feat = jnp.maximum(acc3 + b3, 0.0).astype(bf16)

    # fused critic‖actor heads ------------------------------------------ (N, 128)
    hidden = jnp.maximum(mm(feat, wh1_ref[...]) + bh1, 0.0).astype(bf16)
    out_c = mm(hidden[:, :HEAD_DIM], wh2_ref[...])     # lane 0 = value
    out_a = mm(hidden[:, HEAD_DIM:], wh2_ref[...])     # lanes 1..A = logits
    lane = jax.lax.broadcasted_iota(jnp.int32, out_c.shape, 1)
    out = jnp.where(lane == 0, out_c, out_a) + bh2

    # masked softmax over the action lanes only; exact division so downstream
    # log-prob / entropy use is unbiased.
    is_act = jnp.logical_and(lane >= 1, lane <= action_space)
    masked = jnp.where(is_act, out, f32(-1e30))
    m = jnp.max(masked, axis=-1, keepdims=True)
    e = jnp.exp(masked - m)
    probs = e / jnp.sum(e, axis=-1, keepdims=True)
    o_ref[...] = jnp.where(lane == 0, out, probs).astype(o_ref.dtype)


# ------------------------------ glue (JAX) ------------------------------------
def _conv_out(h, k, s):
    return (h - k) // s + 1


def conv_out_size(h):
    return _conv_out(_conv_out(_conv_out(h, 8, 4), 4, 2), 3, 1)


def _conv1_patches(x):
    """(N,1,H,W) -> (N*OH*OW, 64) im2col for conv1 (k=8, s=4).

    An 8x8 window at stride 4 is a 2x2 arrangement of non-overlapping 4x4
    tiles, so this is a few reshape/transpose ops instead of 64 slices.
    Column order is (kh, kw) row-major, matching c1_w.reshape(32, 64)."""
    n, c, h, w = x.shape
    assert c == 1 and h % 4 == 0 and w % 4 == 0
    oh, ow = _conv_out(h, 8, 4), _conv_out(w, 8, 4)
    t = x.reshape(n, h // 4, 4, w // 4, 4).transpose(0, 1, 3, 2, 4)  # (n,th,tw,4,4)
    blocks = [t[:, da:da + oh, db:db + ow] for da in (0, 1) for db in (0, 1)]
    s = jnp.stack(blocks, axis=3)                                    # (n,oh,ow,4,4,4)
    s = s.reshape(n, oh, ow, 2, 2, 4, 4).transpose(0, 1, 2, 3, 5, 4, 6)
    return s.reshape(n * oh * ow, 64)


def init_params(key, action_space, in_h, in_w):
    feat_h, feat_w = conv_out_size(in_h), conv_out_size(in_w)
    feature_size = 64 * feat_h * feat_w
    ks = jax.random.split(key, 14)

    def w_init(k, shape, fan_in):
        return (jax.random.normal(k, shape, jnp.float32) / jnp.sqrt(fan_in)).astype(jnp.float32)

    return {
        # conv weights in PyTorch layout (OC, C, KH, KW)
        "c1_w": w_init(ks[0], (32, 1, 8, 8), 64),
        "c1_b": w_init(ks[1], (32,), 64),
        "c2_w": w_init(ks[2], (64, 32, 4, 4), 512),
        "c2_b": w_init(ks[3], (64,), 512),
        "c3_w": w_init(ks[4], (64, 64, 3, 3), 576),
        "c3_b": w_init(ks[5], (64,), 576),
        # linear weights stored as (in, out) ready for x @ W
        "cr1_w": w_init(ks[6], (feature_size, 512), feature_size),
        "cr1_b": w_init(ks[7], (512,), feature_size),
        "cr2_w": w_init(ks[8], (512, 1), 512),
        "cr2_b": w_init(ks[9], (1,), 512),
        "ac1_w": w_init(ks[10], (feature_size, 512), feature_size),
        "ac1_b": w_init(ks[11], (512,), feature_size),
        "ac2_w": w_init(ks[12], (512, action_space), 512),
        "ac2_b": w_init(ks[13], (action_space,), 512),
    }


def pack_params(params, n_batch, in_h, in_w, action_space):
    """One-time repack of PyTorch-layout params into the fused-kernel layout."""
    oh1, ow1 = _conv_out(in_h, 8, 4), _conv_out(in_w, 8, 4)
    oh2, ow2 = _conv_out(oh1, 4, 2), _conv_out(ow1, 4, 2)
    oh3, ow3 = _conv_out(oh2, 3, 1), _conv_out(ow2, 3, 1)
    assert oh3 == 1 and ow3 == 1, "fused kernel is specialised to a 1x1 feature map"
    assert action_space + 1 <= OUT_PAD

    m1, m2 = n_batch * oh1 * ow1, n_batch * oh2 * ow2

    # conv2 per-tap (ki,kj) 0/1 row-gather matrices (applied on the MXU).
    # TODO(synk): O(N^2) in batch — move batch to a parallel grid axis with
    # per-sample gathers before scaling to large multi-env batches.
    g2 = np.zeros((16, m2, m1), np.float32)
    for ki in range(4):
        for kj in range(4):
            g = ki * 4 + kj
            for n in range(n_batch):
                for oi in range(oh2):
                    for oj in range(ow2):
                        row = (n * oh2 + oi) * ow2 + oj
                        col = (n * oh1 + (2 * oi + ki)) * ow1 + (2 * oj + kj)
                        g2[g, row, col] = 1.0

    # conv3 per-position gather: picks conv2 output (pi,pj) per batch element.
    g3 = np.zeros((oh2 * ow2, n_batch, m2), np.float32)
    for p in range(oh2 * ow2):
        for n in range(n_batch):
            g3[p, n, n * oh2 * ow2 + p] = 1.0

    bf16 = jnp.bfloat16
    hdim = params["cr1_w"].shape[1]
    assert hdim == HEAD_DIM

    # conv2/conv3 tap weights concatenated along output lanes: tap g = kh*KW+kw
    # occupies columns [g*OC, (g+1)*OC).
    w2_all = jnp.transpose(params["c2_w"], (1, 2, 3, 0)).reshape(32, 16 * 64)
    w3_all = jnp.transpose(params["c3_w"], (1, 2, 3, 0)).reshape(64, 9 * 64)

    # Shared head-out weight: lane 0 = critic value, lanes 1..A = actor logits.
    wh2 = jnp.zeros((hdim, OUT_PAD), jnp.float32)
    wh2 = wh2.at[:, 0:1].set(params["cr2_w"])
    wh2 = wh2.at[:, 1:1 + action_space].set(params["ac2_w"])

    # All biases in one lane-aligned f32 operand (one DMA descriptor).
    b_all = jnp.zeros((1, _B_ALL_W), jnp.float32)
    b_all = b_all.at[0, _B1_OFF:_B1_OFF + 32].set(params["c1_b"])
    b_all = b_all.at[0, _B2_OFF:_B2_OFF + 64].set(params["c2_b"])
    b_all = b_all.at[0, _B3_OFF:_B3_OFF + 64].set(params["c3_b"])
    b_all = b_all.at[0, _BH1_OFF:_BH1_OFF + hdim].set(params["cr1_b"])
    b_all = b_all.at[0, _BH1_OFF + hdim:_BH1_OFF + 2 * hdim].set(params["ac1_b"])
    b_all = b_all.at[0, _BH2_OFF].set(params["cr2_b"][0])
    b_all = b_all.at[0, _BH2_OFF + 1:_BH2_OFF + 1 + action_space].set(params["ac2_b"])

    return {
        "w1": params["c1_w"].reshape(32, 64).T.astype(bf16),                  # (64, 32)
        "g2": jnp.asarray(g2, bf16),                                          # exact 0/1
        "w2": w2_all.astype(bf16),
        "g3": jnp.asarray(g3, bf16),
        "w3": w3_all.astype(bf16),
        "wh1": jnp.concatenate([params["cr1_w"], params["ac1_w"]], axis=1).astype(bf16),
        "wh2": wh2.astype(bf16),
        "b": b_all,                                                           # f32
    }


def forward(packed, x, *, action_space):
    """x: (N, 1, H, W) NCHW -> (value (N,1), action_probs (N, action_space))."""
    n = x.shape[0]
    assert n == packed["g3"].shape[1], (
        "batch size baked into the packed gather matrices does not match x")
    # TODO(synk): fuse this space-to-depth into the kernel (DMA x directly)
    # once batch is tiled on a grid axis; here it is a handful of fused XLA ops.
    p1 = _conv1_patches(x).astype(jnp.bfloat16)
    inputs = [p1, packed["w1"], packed["g2"], packed["w2"],
              packed["g3"], packed["w3"], packed["wh1"], packed["wh2"],
              packed["b"]]
    kern = functools.partial(_a2c_fused_kernel, action_space=action_space)
    out = pl.pallas_call(
        kern,
        out_shape=jax.ShapeDtypeStruct((n, OUT_PAD), jnp.float32),
        # No grid: single block, every operand single-buffered in VMEM.
        in_specs=[pl.BlockSpec(memory_space=pltpu.MemorySpace.VMEM)
                  for _ in inputs],
        out_specs=pl.BlockSpec(memory_space=pltpu.MemorySpace.VMEM),
    )(*inputs)
    value = out[:, 0:1]
    actions = out[:, 1:1 + action_space]
    return value, actions


# ----------------------- plain-JAX reference (sanity check) -------------------
def forward_reference(params, x, action_space):
    dn = ("NCHW", "OIHW", "NCHW")
    prec = jax.lax.Precision.HIGHEST

    def conv(h, w, b, s):
        h = jax.lax.conv_general_dilated(h, w, (s, s), "VALID",
                                         dimension_numbers=dn, precision=prec)
        return jnp.maximum(h + b[None, :, None, None], 0.0)

    def dot(a, b):
        return jnp.dot(a, b, precision=prec)

    h = conv(x, params["c1_w"], params["c1_b"], 4)
    h = conv(h, params["c2_w"], params["c2_b"], 2)
    h = conv(h, params["c3_w"], params["c3_b"], 1)
    feat = h.reshape(h.shape[0], -1)

    v = jnp.maximum(dot(feat, params["cr1_w"]) + params["cr1_b"], 0.0)
    value = dot(v, params["cr2_w"]) + params["cr2_b"]
    a = jnp.maximum(dot(feat, params["ac1_w"]) + params["ac1_b"], 0.0)
    logits = dot(a, params["ac2_w"]) + params["ac2_b"]
    return value, jax.nn.softmax(logits, axis=-1)


# ------------------------------ main ------------------------------------------
if __name__ == "__main__":
    key = jax.random.PRNGKey(0)
    k_param, k_input = jax.random.split(key)

    batch, in_ch, H, W = 2, 1, 36, 36      # conv stack -> 1x1x64 feature map
    action_space = 6

    params = init_params(k_param, action_space, H, W)
    packed = pack_params(params, batch, H, W, action_space)   # one-time repack
    x = jax.random.normal(k_input, (batch, in_ch, H, W), jnp.float32)

    fwd = jax.jit(functools.partial(forward, action_space=action_space))
    value, actions = fwd(packed, x)
    jax.block_until_ready((value, actions))

    assert value.shape == (batch, 1), value.shape
    assert actions.shape == (batch, action_space), actions.shape
    assert bool(jnp.all(jnp.isfinite(value)))
    assert bool(jnp.all(jnp.isfinite(actions)))
    # exact-division softmax sums to 1 to f32 rounding.
    assert jnp.allclose(jnp.sum(actions, axis=-1), 1.0, atol=1e-3)

    # Loose-tolerance sanity check against a plain-JAX reference: the kernel
    # contracts bf16 operands (f32 accumulation), so it is not bit-accurate
    # vs. XLA's HIGHEST-precision f32 path — this is the accepted contract.
    v_ref, a_ref = forward_reference(params, x, action_space)
    assert jnp.allclose(value, v_ref, atol=1e-1, rtol=1e-1)
    assert jnp.allclose(actions, a_ref, atol=5e-2, rtol=5e-2)

    print("KERNEL_OK")
</pallas_src>

<mosaic_0001>
module attributes {stable_mosaic.version = 11 : i64} {
  func.func @_a2c_fused_kernel(%arg0: memref<128x64xbf16, #tpu.memory_space<vmem>>, %arg1: memref<64x32xbf16, #tpu.memory_space<vmem>>, %arg2: memref<16x18x128xbf16, #tpu.memory_space<vmem>>, %arg3: memref<32x1024xbf16, #tpu.memory_space<vmem>>, %arg4: memref<9x2x18xbf16, #tpu.memory_space<vmem>>, %arg5: memref<64x576xbf16, #tpu.memory_space<vmem>>, %arg6: memref<64x1024xbf16, #tpu.memory_space<vmem>>, %arg7: memref<512x128xbf16, #tpu.memory_space<vmem>>, %arg8: memref<1x1536xf32, #tpu.memory_space<vmem>>, %arg9: memref<2x128xf32, #tpu.memory_space<vmem>>) attributes {dimension_semantics = [], scalar_prefetch = 0 : i64, scratch_operands = 0 : i64, tpu.core_type = #tpu.core_type<tc>} {
    %c0 = arith.constant 0 : index
    %c0_0 = arith.constant 0 : index
    %0 = vector.load %arg8[%c0, %c0_0] : memref<1x1536xf32, #tpu.memory_space<vmem>>, vector<1x32xf32>
    %c0_1 = arith.constant 0 : index
    %c128 = arith.constant 128 : index
    %1 = vector.load %arg8[%c0_1, %c128] : memref<1x1536xf32, #tpu.memory_space<vmem>>, vector<1x64xf32>
    %c0_2 = arith.constant 0 : index
    %c256 = arith.constant 256 : index
    %2 = vector.load %arg8[%c0_2, %c256] : memref<1x1536xf32, #tpu.memory_space<vmem>>, vector<1x64xf32>
    %c0_3 = arith.constant 0 : index
    %c384 = arith.constant 384 : index
    %3 = vector.load %arg8[%c0_3, %c384] : memref<1x1536xf32, #tpu.memory_space<vmem>>, vector<1x1024xf32>
    %c0_4 = arith.constant 0 : index
    %c1408 = arith.constant 1408 : index
    %4 = vector.load %arg8[%c0_4, %c1408] : memref<1x1536xf32, #tpu.memory_space<vmem>>, vector<1x128xf32>
    %c0_5 = arith.constant 0 : index
    %c0_6 = arith.constant 0 : index
    %5 = vector.load %arg0[%c0_5, %c0_6] : memref<128x64xbf16, #tpu.memory_space<vmem>>, vector<128x64xbf16>
    %c0_7 = arith.constant 0 : index
    %c0_8 = arith.constant 0 : index
    %6 = vector.load %arg1[%c0_7, %c0_8] : memref<64x32xbf16, #tpu.memory_space<vmem>>, vector<64x32xbf16>
    %cst = arith.constant dense<0.000000e+00> : vector<128x32xf32>
    %7 = tpu.matmul %5, %6, %cst {dimension_numbers = #tpu.dot_dimension_numbers<[1], [0], [0], [1], [0, 0, 1, 1], [], []>} : vector<128x64xbf16>, vector<64x32xbf16>, vector<128x32xf32> -> vector<128x32xf32>
    %8 = vector.broadcast %0 : vector<1x32xf32> to vector<128x32xf32>
    %9 = arith.addf %7, %8 : vector<128x32xf32>
    %cst_9 = arith.constant 0.000000e+00 : f32
    %10 = vector.broadcast %cst_9 : f32 to vector<128x32xf32>
    %11 = arith.maximumf %9, %10 : vector<128x32xf32>
    %12 = arith.truncf %11 : vector<128x32xf32> to vector<128x32xbf16>
    %c0_10 = arith.constant 0 : index
    %c0_11 = arith.constant 0 : index
    %13 = vector.load %arg3[%c0_10, %c0_11] : memref<32x1024xbf16, #tpu.memory_space<vmem>>, vector<32x1024xbf16>
    %cst_12 = arith.constant dense<0.000000e+00> : vector<128x1024xf32>
    %14 = tpu.matmul %12, %13, %cst_12 {dimension_numbers = #tpu.dot_dimension_numbers<[1], [0], [0], [1], [0, 0, 1, 1], [], []>} : vector<128x32xbf16>, vector<32x1024xbf16>, vector<128x1024xf32> -> vector<128x1024xf32>
    %15 = arith.truncf %14 : vector<128x1024xf32> to vector<128x1024xbf16>
    %c0_13 = arith.constant 0 : index
    %c0_14 = arith.constant 0 : index
    %c0_15 = arith.constant 0 : index
    %16 = vector.load %arg2[%c0_13, %c0_14, %c0_15] : memref<16x18x128xbf16, #tpu.memory_space<vmem>>, vector<1x18x128xbf16>
    %17 = vector.shape_cast %16 : vector<1x18x128xbf16> to vector<18x128xbf16>
    %18 = vector.extract_strided_slice %15 {offsets = [0, 0], sizes = [128, 64], strides = [1, 1]} : vector<128x1024xbf16> to vector<128x64xbf16>
    %cst_16 = arith.constant dense<0.000000e+00> : vector<18x64xf32>
    %19 = tpu.matmul %17, %18, %cst_16 {dimension_numbers = #tpu.dot_dimension_numbers<[1], [0], [0], [1], [0, 0, 1, 1], [], []>} : vector<18x128xbf16>, vector<128x64xbf16>, vector<18x64xf32> -> vector<18x64xf32>
    %c1 = arith.constant 1 : index
    %c0_17 = arith.constant 0 : index
    %c0_18 = arith.constant 0 : index
    %20 = vector.load %arg2[%c1, %c0_17, %c0_18] : memref<16x18x128xbf16, #tpu.memory_space<vmem>>, vector<1x18x128xbf16>
    %21 = vector.shape_cast %20 : vector<1x18x128xbf16> to vector<18x128xbf16>
    %22 = vector.extract_strided_slice %15 {offsets = [0, 64], sizes = [128, 64], strides = [1, 1]} : vector<128x1024xbf16> to vector<128x64xbf16>
    %cst_19 = arith.constant dense<0.000000e+00> : vector<18x64xf32>
    %23 = tpu.matmul %21, %22, %cst_19 {dimension_numbers = #tpu.dot_dimension_numbers<[1], [0], [0], [1], [0, 0, 1, 1], [], []>} : vector<18x128xbf16>, vector<128x64xbf16>, vector<18x64xf32> -> vector<18x64xf32>
    %c2 = arith.constant 2 : index
    %c0_20 = arith.constant 0 : index
    %c0_21 = arith.constant 0 : index
    %24 = vector.load %arg2[%c2, %c0_20, %c0_21] : memref<16x18x128xbf16, #tpu.memory_space<vmem>>, vector<1x18x128xbf16>
    %25 = vector.shape_cast %24 : vector<1x18x128xbf16> to vector<18x128xbf16>
    %26 = vector.extract_strided_slice %15 {offsets = [0, 128], sizes = [128, 64], strides = [1, 1]} : vector<128x1024xbf16> to vector<128x64xbf16>
    %cst_22 = arith.constant dense<0.000000e+00> : vector<18x64xf32>
    %27 = tpu.matmul %25, %26, %cst_22 {dimension_numbers = #tpu.dot_dimension_numbers<[1], [0], [0], [1], [0, 0, 1, 1], [], []>} : vector<18x128xbf16>, vector<128x64xbf16>, vector<18x64xf32> -> vector<18x64xf32>
    %c3 = arith.constant 3 : index
    %c0_23 = arith.constant 0 : index
    %c0_24 = arith.constant 0 : index
    %28 = vector.load %arg2[%c3, %c0_23, %c0_24] : memref<16x18x128xbf16, #tpu.memory_space<vmem>>, vector<1x18x128xbf16>
    %29 = vector.shape_cast %28 : vector<1x18x128xbf16> to vector<18x128xbf16>
    %30 = vector.extract_strided_slice %15 {offsets = [0, 192], sizes = [128, 64], strides = [1, 1]} : vector<128x1024xbf16> to vector<128x64xbf16>
    %cst_25 = arith.constant dense<0.000000e+00> : vector<18x64xf32>
    %31 = tpu.matmul %29, %30, %cst_25 {dimension_numbers = #tpu.dot_dimension_numbers<[1], [0], [0], [1], [0, 0, 1, 1], [], []>} : vector<18x128xbf16>, vector<128x64xbf16>, vector<18x64xf32> -> vector<18x64xf32>
    %c4 = arith.constant 4 : index
    %c0_26 = arith.constant 0 : index
    %c0_27 = arith.constant 0 : index
    %32 = vector.load %arg2[%c4, %c0_26, %c0_27] : memref<16x18x128xbf16, #tpu.memory_space<vmem>>, vector<1x18x128xbf16>
    %33 = vector.shape_cast %32 : vector<1x18x128xbf16> to vector<18x128xbf16>
    %34 = vector.extract_strided_slice %15 {offsets = [0, 256], sizes = [128, 64], strides = [1, 1]} : vector<128x1024xbf16> to vector<128x64xbf16>
    %cst_28 = arith.constant dense<0.000000e+00> : vector<18x64xf32>
    %35 = tpu.matmul %33, %34, %cst_28 {dimension_numbers = #tpu.dot_dimension_numbers<[1], [0], [0], [1], [0, 0, 1, 1], [], []>} : vector<18x128xbf16>, vector<128x64xbf16>, vector<18x64xf32> -> vector<18x64xf32>
    %c5 = arith.constant 5 : index
    %c0_29 = arith.constant 0 : index
    %c0_30 = arith.constant 0 : index
    %36 = vector.load %arg2[%c5, %c0_29, %c0_30] : memref<16x18x128xbf16, #tpu.memory_space<vmem>>, vector<1x18x128xbf16>
    %37 = vector.shape_cast %36 : vector<1x18x128xbf16> to vector<18x128xbf16>
    %38 = vector.extract_strided_slice %15 {offsets = [0, 320], sizes = [128, 64], strides = [1, 1]} : vector<128x1024xbf16> to vector<128x64xbf16>
    %cst_31 = arith.constant dense<0.000000e+00> : vector<18x64xf32>
    %39 = tpu.matmul %37, %38, %cst_31 {dimension_numbers = #tpu.dot_dimension_numbers<[1], [0], [0], [1], [0, 0, 1, 1], [], []>} : vector<18x128xbf16>, vector<128x64xbf16>, vector<18x64xf32> -> vector<18x64xf32>
    %c6 = arith.constant 6 : index
    %c0_32 = arith.constant 0 : index
    %c0_33 = arith.constant 0 : index
    %40 = vector.load %arg2[%c6, %c0_32, %c0_33] : memref<16x18x128xbf16, #tpu.memory_space<vmem>>, vector<1x18x128xbf16>
    %41 = vector.shape_cast %40 : vector<1x18x128xbf16> to vector<18x128xbf16>
    %42 = vector.extract_strided_slice %15 {offsets = [0, 384], sizes = [128, 64], strides = [1, 1]} : vector<128x1024xbf16> to vector<128x64xbf16>
    %cst_34 = arith.constant dense<0.000000e+00> : vector<18x64xf32>
    %43 = tpu.matmul %41, %42, %cst_34 {dimension_numbers = #tpu.dot_dimension_numbers<[1], [0], [0], [1], [0, 0, 1, 1], [], []>} : vector<18x128xbf16>, vector<128x64xbf16>, vector<18x64xf32> -> vector<18x64xf32>
    %c7 = arith.constant 7 : index
    %c0_35 = arith.constant 0 : index
    %c0_36 = arith.constant 0 : index
    %44 = vector.load %arg2[%c7, %c0_35, %c0_36] : memref<16x18x128xbf16, #tpu.memory_space<vmem>>, vector<1x18x128xbf16>
    %45 = vector.shape_cast %44 : vector<1x18x128xbf16> to vector<18x128xbf16>
    %46 = vector.extract_strided_slice %15 {offsets = [0, 448], sizes = [128, 64], strides = [1, 1]} : vector<128x1024xbf16> to vector<128x64xbf16>
    %cst_37 = arith.constant dense<0.000000e+00> : vector<18x64xf32>
    %47 = tpu.matmul %45, %46, %cst_37 {dimension_numbers = #tpu.dot_dimension_numbers<[1], [0], [0], [1], [0, 0, 1, 1], [], []>} : vector<18x128xbf16>, vector<128x64xbf16>, vector<18x64xf32> -> vector<18x64xf32>
    %c8 = arith.constant 8 : index
    %c0_38 = arith.constant 0 : index
    %c0_39 = arith.constant 0 : index
    %48 = vector.load %arg2[%c8, %c0_38, %c0_39] : memref<16x18x128xbf16, #tpu.memory_space<vmem>>, vector<1x18x128xbf16>
    %49 = vector.shape_cast %48 : vector<1x18x128xbf16> to vector<18x128xbf16>
    %50 = vector.extract_strided_slice %15 {offsets = [0, 512], sizes = [128, 64], strides = [1, 1]} : vector<128x1024xbf16> to vector<128x64xbf16>
    %cst_40 = arith.constant dense<0.000000e+00> : vector<18x64xf32>
    %51 = tpu.matmul %49, %50, %cst_40 {dimension_numbers = #tpu.dot_dimension_numbers<[1], [0], [0], [1], [0, 0, 1, 1], [], []>} : vector<18x128xbf16>, vector<128x64xbf16>, vector<18x64xf32> -> vector<18x64xf32>
    %c9 = arith.constant 9 : index
    %c0_41 = arith.constant 0 : index
    %c0_42 = arith.constant 0 : index
    %52 = vector.load %arg2[%c9, %c0_41, %c0_42] : memref<16x18x128xbf16, #tpu.memory_space<vmem>>, vector<1x18x128xbf16>
    %53 = vector.shape_cast %52 : vector<1x18x128xbf16> to vector<18x128xbf16>
    %54 = vector.extract_strided_slice %15 {offsets = [0, 576], sizes = [128, 64], strides = [1, 1]} : vector<128x1024xbf16> to vector<128x64xbf16>
    %cst_43 = arith.constant dense<0.000000e+00> : vector<18x64xf32>
    %55 = tpu.matmul %53, %54, %cst_43 {dimension_numbers = #tpu.dot_dimension_numbers<[1], [0], [0], [1], [0, 0, 1, 1], [], []>} : vector<18x128xbf16>, vector<128x64xbf16>, vector<18x64xf32> -> vector<18x64xf32>
    %c10 = arith.constant 10 : index
    %c0_44 = arith.constant 0 : index
    %c0_45 = arith.constant 0 : index
    %56 = vector.load %arg2[%c10, %c0_44, %c0_45] : memref<16x18x128xbf16, #tpu.memory_space<vmem>>, vector<1x18x128xbf16>
    %57 = vector.shape_cast %56 : vector<1x18x128xbf16> to vector<18x128xbf16>
    %58 = vector.extract_strided_slice %15 {offsets = [0, 640], sizes = [128, 64], strides = [1, 1]} : vector<128x1024xbf16> to vector<128x64xbf16>
    %cst_46 = arith.constant dense<0.000000e+00> : vector<18x64xf32>
    %59 = tpu.matmul %57, %58, %cst_46 {dimension_numbers = #tpu.dot_dimension_numbers<[1], [0], [0], [1], [0, 0, 1, 1], [], []>} : vector<18x128xbf16>, vector<128x64xbf16>, vector<18x64xf32> -> vector<18x64xf32>
    %c11 = arith.constant 11 : index
    %c0_47 = arith.constant 0 : index
    %c0_48 = arith.constant 0 : index
    %60 = vector.load %arg2[%c11, %c0_47, %c0_48] : memref<16x18x128xbf16, #tpu.memory_space<vmem>>, vector<1x18x128xbf16>
    %61 = vector.shape_cast %60 : vector<1x18x128xbf16> to vector<18x128xbf16>
    %62 = vector.extract_strided_slice %15 {offsets = [0, 704], sizes = [128, 64], strides = [1, 1]} : vector<128x1024xbf16> to vector<128x64xbf16>
    %cst_49 = arith.constant dense<0.000000e+00> : vector<18x64xf32>
    %63 = tpu.matmul %61, %62, %cst_49 {dimension_numbers = #tpu.dot_dimension_numbers<[1], [0], [0], [1], [0, 0, 1, 1], [], []>} : vector<18x128xbf16>, vector<128x64xbf16>, vector<18x64xf32> -> vector<18x64xf32>
    %c12 = arith.constant 12 : index
    %c0_50 = arith.constant 0 : index
    %c0_51 = arith.constant 0 : index
    %64 = vector.load %arg2[%c12, %c0_50, %c0_51] : memref<16x18x128xbf16, #tpu.memory_space<vmem>>, vector<1x18x128xbf16>
    %65 = vector.shape_cast %64 : vector<1x18x128xbf16> to vector<18x128xbf16>
    %66 = vector.extract_strided_slice %15 {offsets = [0, 768], sizes = [128, 64], strides = [1, 1]} : vector<128x1024xbf16> to vector<128x64xbf16>
    %cst_52 = arith.constant dense<0.000000e+00> : vector<18x64xf32>
    %67 = tpu.matmul %65, %66, %cst_52 {dimension_numbers = #tpu.dot_dimension_numbers<[1], [0], [0], [1], [0, 0, 1, 1], [], []>} : vector<18x128xbf16>, vector<128x64xbf16>, vector<18x64xf32> -> vector<18x64xf32>
    %c13 = arith.constant 13 : index
    %c0_53 = arith.constant 0 : index
    %c0_54 = arith.constant 0 : index
    %68 = vector.load %arg2[%c13, %c0_53, %c0_54] : memref<16x18x128xbf16, #tpu.memory_space<vmem>>, vector<1x18x128xbf16>
    %69 = vector.shape_cast %68 : vector<1x18x128xbf16> to vector<18x128xbf16>
    %70 = vector.extract_strided_slice %15 {offsets = [0, 832], sizes = [128, 64], strides = [1, 1]} : vector<128x1024xbf16> to vector<128x64xbf16>
    %cst_55 = arith.constant dense<0.000000e+00> : vector<18x64xf32>
    %71 = tpu.matmul %69, %70, %cst_55 {dimension_numbers = #tpu.dot_dimension_numbers<[1], [0], [0], [1], [0, 0, 1, 1], [], []>} : vector<18x128xbf16>, vector<128x64xbf16>, vector<18x64xf32> -> vector<18x64xf32>
    %c14 = arith.constant 14 : index
    %c0_56 = arith.constant 0 : index
    %c0_57 = arith.constant 0 : index
    %72 = vector.load %arg2[%c14, %c0_56, %c0_57] : memref<16x18x128xbf16, #tpu.memory_space<vmem>>, vector<1x18x128xbf16>
    %73 = vector.shape_cast %72 : vector<1x18x128xbf16> to vector<18x128xbf16>
    %74 = vector.extract_strided_slice %15 {offsets = [0, 896], sizes = [128, 64], strides = [1, 1]} : vector<128x1024xbf16> to vector<128x64xbf16>
    %cst_58 = arith.constant dense<0.000000e+00> : vector<18x64xf32>
    %75 = tpu.matmul %73, %74, %cst_58 {dimension_numbers = #tpu.dot_dimension_numbers<[1], [0], [0], [1], [0, 0, 1, 1], [], []>} : vector<18x128xbf16>, vector<128x64xbf16>, vector<18x64xf32> -> vector<18x64xf32>
    %c15 = arith.constant 15 : index
    %c0_59 = arith.constant 0 : index
    %c0_60 = arith.constant 0 : index
    %76 = vector.load %arg2[%c15, %c0_59, %c0_60] : memref<16x18x128xbf16, #tpu.memory_space<vmem>>, vector<1x18x128xbf16>
    %77 = vector.shape_cast %76 : vector<1x18x128xbf16> to vector<18x128xbf16>
    %78 = vector.extract_strided_slice %15 {offsets = [0, 960], sizes = [128, 64], strides = [1, 1]} : vector<128x1024xbf16> to vector<128x64xbf16>
    %cst_61 = arith.constant dense<0.000000e+00> : vector<18x64xf32>
    %79 = tpu.matmul %77, %78, %cst_61 {dimension_numbers = #tpu.dot_dimension_numbers<[1], [0], [0], [1], [0, 0, 1, 1], [], []>} : vector<18x128xbf16>, vector<128x64xbf16>, vector<18x64xf32> -> vector<18x64xf32>
    %80 = arith.addf %19, %23 : vector<18x64xf32>
    %81 = arith.addf %27, %31 : vector<18x64xf32>
    %82 = arith.addf %35, %39 : vector<18x64xf32>
    %83 = arith.addf %43, %47 : vector<18x64xf32>
    %84 = arith.addf %51, %55 : vector<18x64xf32>
    %85 = arith.addf %59, %63 : vector<18x64xf32>
    %86 = arith.addf %67, %71 : vector<18x64xf32>
    %87 = arith.addf %75, %79 : vector<18x64xf32>
    %88 = arith.addf %80, %81 : vector<18x64xf32>
    %89 = arith.addf %82, %83 : vector<18x64xf32>
    %90 = arith.addf %84, %85 : vector<18x64xf32>
    %91 = arith.addf %86, %87 : vector<18x64xf32>
    %92 = arith.addf %88, %89 : vector<18x64xf32>
    %93 = arith.addf %90, %91 : vector<18x64xf32>
    %94 = arith.addf %92, %93 : vector<18x64xf32>
    %95 = vector.broadcast %1 : vector<1x64xf32> to vector<18x64xf32>
    %96 = arith.addf %94, %95 : vector<18x64xf32>
    %cst_62 = arith.constant 0.000000e+00 : f32
    %97 = vector.broadcast %cst_62 : f32 to vector<18x64xf32>
    %98 = arith.maximumf %96, %97 : vector<18x64xf32>
    %99 = arith.truncf %98 : vector<18x64xf32> to vector<18x64xbf16>
    %c0_63 = arith.constant 0 : index
    %c0_64 = arith.constant 0 : index
    %100 = vector.load %arg5[%c0_63, %c0_64] : memref<64x576xbf16, #tpu.memory_space<vmem>>, vector<64x576xbf16>
    %cst_65 = arith.constant dense<0.000000e+00> : vector<18x576xf32>
    %101 = tpu.matmul %99, %100, %cst_65 {dimension_numbers = #tpu.dot_dimension_numbers<[1], [0], [0], [1], [0, 0, 1, 1], [], []>} : vector<18x64xbf16>, vector<64x576xbf16>, vector<18x576xf32> -> vector<18x576xf32>
    %102 = arith.truncf %101 : vector<18x576xf32> to vector<18x576xbf16>
    %c0_66 = arith.constant 0 : index
    %c0_67 = arith.constant 0 : index
    %c0_68 = arith.constant 0 : index
    %103 = vector.load %arg4[%c0_66, %c0_67, %c0_68] : memref<9x2x18xbf16, #tpu.memory_space<vmem>>, vector<1x2x18xbf16>
    %104 = vector.shape_cast %103 : vector<1x2x18xbf16> to vector<2x18xbf16>
    %105 = vector.extract_strided_slice %102 {offsets = [0, 0], sizes = [18, 64], strides = [1, 1]} : vector<18x576xbf16> to vector<18x64xbf16>
    %cst_69 = arith.constant dense<0.000000e+00> : vector<2x64xf32>
    %106 = tpu.matmul %104, %105, %cst_69 {dimension_numbers = #tpu.dot_dimension_numbers<[1], [0], [0], [1], [0, 0, 1, 1], [], []>} : vector<2x18xbf16>, vector<18x64xbf16>, vector<2x64xf32> -> vector<2x64xf32>
    %c1_70 = arith.constant 1 : index
    %c0_71 = arith.constant 0 : index
    %c0_72 = arith.constant 0 : index
    %107 = vector.load %arg4[%c1_70, %c0_71, %c0_72] : memref<9x2x18xbf16, #tpu.memory_space<vmem>>, vector<1x2x18xbf16>
    %108 = vector.shape_cast %107 : vector<1x2x18xbf16> to vector<2x18xbf16>
    %109 = vector.extract_strided_slice %102 {offsets = [0, 64], sizes = [18, 64], strides = [1, 1]} : vector<18x576xbf16> to vector<18x64xbf16>
    %cst_73 = arith.constant dense<0.000000e+00> : vector<2x64xf32>
    %110 = tpu.matmul %108, %109, %cst_73 {dimension_numbers = #tpu.dot_dimension_numbers<[1], [0], [0], [1], [0, 0, 1, 1], [], []>} : vector<2x18xbf16>, vector<18x64xbf16>, vector<2x64xf32> -> vector<2x64xf32>
    %c2_74 = arith.constant 2 : index
    %c0_75 = arith.constant 0 : index
    %c0_76 = arith.constant 0 : index
    %111 = vector.load %arg4[%c2_74, %c0_75, %c0_76] : memref<9x2x18xbf16, #tpu.memory_space<vmem>>, vector<1x2x18xbf16>
    %112 = vector.shape_cast %111 : vector<1x2x18xbf16> to vector<2x18xbf16>
    %113 = vector.extract_strided_slice %102 {offsets = [0, 128], sizes = [18, 64], strides = [1, 1]} : vector<18x576xbf16> to vector<18x64xbf16>
    %cst_77 = arith.constant dense<0.000000e+00> : vector<2x64xf32>
    %114 = tpu.matmul %112, %113, %cst_77 {dimension_numbers = #tpu.dot_dimension_numbers<[1], [0], [0], [1], [0, 0, 1, 1], [], []>} : vector<2x18xbf16>, vector<18x64xbf16>, vector<2x64xf32> -> vector<2x64xf32>
    %c3_78 = arith.constant 3 : index
    %c0_79 = arith.constant 0 : index
    %c0_80 = arith.constant 0 : index
    %115 = vector.load %arg4[%c3_78, %c0_79, %c0_80] : memref<9x2x18xbf16, #tpu.memory_space<vmem>>, vector<1x2x18xbf16>
    %116 = vector.shape_cast %115 : vector<1x2x18xbf16> to vector<2x18xbf16>
    %117 = vector.extract_strided_slice %102 {offsets = [0, 192], sizes = [18, 64], strides = [1, 1]} : vector<18x576xbf16> to vector<18x64xbf16>
    %cst_81 = arith.constant dense<0.000000e+00> : vector<2x64xf32>
    %118 = tpu.matmul %116, %117, %cst_81 {dimension_numbers = #tpu.dot_dimension_numbers<[1], [0], [0], [1], [0, 0, 1, 1], [], []>} : vector<2x18xbf16>, vector<18x64xbf16>, vector<2x64xf32> -> vector<2x64xf32>
    %c4_82 = arith.constant 4 : index
    %c0_83 = arith.constant 0 : index
    %c0_84 = arith.constant 0 : index
    %119 = vector.load %arg4[%c4_82, %c0_83, %c0_84] : memref<9x2x18xbf16, #tpu.memory_space<vmem>>, vector<1x2x18xbf16>
    %120 = vector.shape_cast %119 : vector<1x2x18xbf16> to vector<2x18xbf16>
    %121 = vector.extract_strided_slice %102 {offsets = [0, 256], sizes = [18, 64], strides = [1, 1]} : vector<18x576xbf16> to vector<18x64xbf16>
    %cst_85 = arith.constant dense<0.000000e+00> : vector<2x64xf32>
    %122 = tpu.matmul %120, %121, %cst_85 {dimension_numbers = #tpu.dot_dimension_numbers<[1], [0], [0], [1], [0, 0, 1, 1], [], []>} : vector<2x18xbf16>, vector<18x64xbf16>, vector<2x64xf32> -> vector<2x64xf32>
    %c5_86 = arith.constant 5 : index
    %c0_87 = arith.constant 0 : index
    %c0_88 = arith.constant 0 : index
    %123 = vector.load %arg4[%c5_86, %c0_87, %c0_88] : memref<9x2x18xbf16, #tpu.memory_space<vmem>>, vector<1x2x18xbf16>
    %124 = vector.shape_cast %123 : vector<1x2x18xbf16> to vector<2x18xbf16>
    %125 = vector.extract_strided_slice %102 {offsets = [0, 320], sizes = [18, 64], strides = [1, 1]} : vector<18x576xbf16> to vector<18x64xbf16>
    %cst_89 = arith.constant dense<0.000000e+00> : vector<2x64xf32>
    %126 = tpu.matmul %124, %125, %cst_89 {dimension_numbers = #tpu.dot_dimension_numbers<[1], [0], [0], [1], [0, 0, 1, 1], [], []>} : vector<2x18xbf16>, vector<18x64xbf16>, vector<2x64xf32> -> vector<2x64xf32>
    %c6_90 = arith.constant 6 : index
    %c0_91 = arith.constant 0 : index
    %c0_92 = arith.constant 0 : index
    %127 = vector.load %arg4[%c6_90, %c0_91, %c0_92] : memref<9x2x18xbf16, #tpu.memory_space<vmem>>, vector<1x2x18xbf16>
    %128 = vector.shape_cast %127 : vector<1x2x18xbf16> to vector<2x18xbf16>
    %129 = vector.extract_strided_slice %102 {offsets = [0, 384], sizes = [18, 64], strides = [1, 1]} : vector<18x576xbf16> to vector<18x64xbf16>
    %cst_93 = arith.constant dense<0.000000e+00> : vector<2x64xf32>
    %130 = tpu.matmul %128, %129, %cst_93 {dimension_numbers = #tpu.dot_dimension_numbers<[1], [0], [0], [1], [0, 0, 1, 1], [], []>} : vector<2x18xbf16>, vector<18x64xbf16>, vector<2x64xf32> -> vector<2x64xf32>
    %c7_94 = arith.constant 7 : index
    %c0_95 = arith.constant 0 : index
    %c0_96 = arith.constant 0 : index
    %131 = vector.load %arg4[%c7_94, %c0_95, %c0_96] : memref<9x2x18xbf16, #tpu.memory_space<vmem>>, vector<1x2x18xbf16>
    %132 = vector.shape_cast %131 : vector<1x2x18xbf16> to vector<2x18xbf16>
    %133 = vector.extract_strided_slice %102 {offsets = [0, 448], sizes = [18, 64], strides = [1, 1]} : vector<18x576xbf16> to vector<18x64xbf16>
    %cst_97 = arith.constant dense<0.000000e+00> : vector<2x64xf32>
    %134 = tpu.matmul %132, %133, %cst_97 {dimension_numbers = #tpu.dot_dimension_numbers<[1], [0], [0], [1], [0, 0, 1, 1], [], []>} : vector<2x18xbf16>, vector<18x64xbf16>, vector<2x64xf32> -> vector<2x64xf32>
    %c8_98 = arith.constant 8 : index
    %c0_99 = arith.constant 0 : index
    %c0_100 = arith.constant 0 : index
    %135 = vector.load %arg4[%c8_98, %c0_99, %c0_100] : memref<9x2x18xbf16, #tpu.memory_space<vmem>>, vector<1x2x18xbf16>
    %136 = vector.shape_cast %135 : vector<1x2x18xbf16> to vector<2x18xbf16>
    %137 = vector.extract_strided_slice %102 {offsets = [0, 512], sizes = [18, 64], strides = [1, 1]} : vector<18x576xbf16> to vector<18x64xbf16>
    %cst_101 = arith.constant dense<0.000000e+00> : vector<2x64xf32>
    %138 = tpu.matmul %136, %137, %cst_101 {dimension_numbers = #tpu.dot_dimension_numbers<[1], [0], [0], [1], [0, 0, 1, 1], [], []>} : vector<2x18xbf16>, vector<18x64xbf16>, vector<2x64xf32> -> vector<2x64xf32>
    %139 = arith.addf %106, %110 : vector<2x64xf32>
    %140 = arith.addf %114, %118 : vector<2x64xf32>
    %141 = arith.addf %122, %126 : vector<2x64xf32>
    %142 = arith.addf %130, %134 : vector<2x64xf32>
    %143 = arith.addf %139, %140 : vector<2x64xf32>
    %144 = arith.addf %141, %142 : vector<2x64xf32>
    %145 = arith.addf %143, %144 : vector<2x64xf32>
    %146 = arith.addf %145, %138 : vector<2x64xf32>
    %147 = vector.broadcast %2 : vector<1x64xf32> to vector<2x64xf32>
    %148 = arith.addf %146, %147 : vector<2x64xf32>
    %cst_102 = arith.constant 0.000000e+00 : f32
    %149 = vector.broadcast %cst_102 : f32 to vector<2x64xf32>
    %150 = arith.maximumf %148, %149 : vector<2x64xf32>
    %151 = arith.truncf %150 : vector<2x64xf32> to vector<2x64xbf16>
    %c0_103 = arith.constant 0 : index
    %c0_104 = arith.constant 0 : index
    %152 = vector.load %arg6[%c0_103, %c0_104] : memref<64x1024xbf16, #tpu.memory_space<vmem>>, vector<64x1024xbf16>
    %cst_105 = arith.constant dense<0.000000e+00> : vector<2x1024xf32>
    %153 = tpu.matmul %151, %152, %cst_105 {dimension_numbers = #tpu.dot_dimension_numbers<[1], [0], [0], [1], [0, 0, 1, 1], [], []>} : vector<2x64xbf16>, vector<64x1024xbf16>, vector<2x1024xf32> -> vector<2x1024xf32>
    %154 = vector.broadcast %3 : vector<1x1024xf32> to vector<2x1024xf32>
    %155 = arith.addf %153, %154 : vector<2x1024xf32>
    %cst_106 = arith.constant 0.000000e+00 : f32
    %156 = vector.broadcast %cst_106 : f32 to vector<2x1024xf32>
    %157 = arith.maximumf %155, %156 : vector<2x1024xf32>
    %158 = arith.truncf %157 : vector<2x1024xf32> to vector<2x1024xbf16>
    %159 = vector.extract_strided_slice %158 {offsets = [0, 0], sizes = [2, 512], strides = [1, 1]} : vector<2x1024xbf16> to vector<2x512xbf16>
    %c0_107 = arith.constant 0 : index
    %c0_108 = arith.constant 0 : index
    %160 = vector.load %arg7[%c0_107, %c0_108] : memref<512x128xbf16, #tpu.memory_space<vmem>>, vector<512x128xbf16>
    %cst_109 = arith.constant dense<0.000000e+00> : vector<2x128xf32>
    %161 = tpu.matmul %159, %160, %cst_109 {dimension_numbers = #tpu.dot_dimension_numbers<[1], [0], [0], [1], [0, 0, 1, 1], [], []>} : vector<2x512xbf16>, vector<512x128xbf16>, vector<2x128xf32> -> vector<2x128xf32>
    %162 = vector.extract_strided_slice %158 {offsets = [0, 512], sizes = [2, 512], strides = [1, 1]} : vector<2x1024xbf16> to vector<2x512xbf16>
    %c0_110 = arith.constant 0 : index
    %c0_111 = arith.constant 0 : index
    %163 = vector.load %arg7[%c0_110, %c0_111] : memref<512x128xbf16, #tpu.memory_space<vmem>>, vector<512x128xbf16>
    %cst_112 = arith.constant dense<0.000000e+00> : vector<2x128xf32>
    %164 = tpu.matmul %162, %163, %cst_112 {dimension_numbers = #tpu.dot_dimension_numbers<[1], [0], [0], [1], [0, 0, 1, 1], [], []>} : vector<2x512xbf16>, vector<512x128xbf16>, vector<2x128xf32> -> vector<2x128xf32>
    %165 = tpu.iota {dimensions = array<i32: 1>} : vector<2x128xi32>
    %c0_i32 = arith.constant 0 : i32
    %166 = vector.broadcast %c0_i32 : i32 to vector<2x128xi32>
    %167 = arith.cmpi eq, %165, %166 : vector<2x128xi32>
    %168 = arith.select %167, %161, %164 : vector<2x128xi1>, vector<2x128xf32>
    %169 = vector.broadcast %4 : vector<1x128xf32> to vector<2x128xf32>
    %170 = arith.addf %168, %169 : vector<2x128xf32>
    %c1_i32 = arith.constant 1 : i32
    %171 = vector.broadcast %c1_i32 : i32 to vector<2x128xi32>
    %172 = arith.cmpi sge, %165, %171 : vector<2x128xi32>
    %c6_i32 = arith.constant 6 : i32
    %173 = vector.broadcast %c6_i32 : i32 to vector<2x128xi32>
    %174 = arith.cmpi sle, %165, %173 : vector<2x128xi32>
    %175 = arith.andi %172, %174 : vector<2x128xi1>
    %cst_113 = arith.constant -1.000000e+30 : f32
    %176 = vector.broadcast %cst_113 : f32 to vector<2x128xf32>
    %177 = arith.select %175, %170, %176 : vector<2x128xi1>, vector<2x128xf32>
    %cst_114 = arith.constant dense<0xFF800000> : vector<2xf32>
    %178 = vector.multi_reduction <maximumf>, %177, %cst_114 [1] : vector<2x128xf32> to vector<2xf32>
    %179 = vector.shape_cast %178 : vector<2xf32> to vector<2x1xf32>
    %180 = vector.broadcast %179 : vector<2x1xf32> to vector<2x128xf32>
    %181 = arith.subf %177, %180 : vector<2x128xf32>
    %182 = math.exp %181 : vector<2x128xf32>
    %cst_115 = arith.constant dense<0.000000e+00> : vector<2xf32>
    %183 = vector.multi_reduction <add>, %182, %cst_115 [1] : vector<2x128xf32> to vector<2xf32>
    %184 = vector.shape_cast %183 : vector<2xf32> to vector<2x1xf32>
    %185 = vector.broadcast %184 : vector<2x1xf32> to vector<2x128xf32>
    %186 = arith.divf %182, %185 : vector<2x128xf32>
    %c0_i32_116 = arith.constant 0 : i32
    %187 = vector.broadcast %c0_i32_116 : i32 to vector<2x128xi32>
    %188 = arith.cmpi eq, %165, %187 : vector<2x128xi32>
    %189 = arith.select %188, %170, %186 : vector<2x128xi1>, vector<2x128xf32>
    %c0_117 = arith.constant 0 : index
    %c0_118 = arith.constant 0 : index
    %190 = vector.load %arg9[%c0_117, %c0_118] : memref<2x128xf32, #tpu.memory_space<vmem>>, vector<2x128xf32>
    tpu.vector_store %arg9[%c0_117, %c0_118], %189 {strides = array<i32>} : memref<2x128xf32, #tpu.memory_space<vmem>>, vector<2x128xf32>,
    return
  }
}

</mosaic_0001>

<bundles_post_ra>
// kernel: forward.1
= control target key start
LH: loop header
LB: loop body
LE: loop exit
PB: predicated region body
PF: predicated region fallthrough
CT: control target
= control target key end

     0   :  { %vm132_vm0 = vcmask 523264   ;;  %v6333_v28 = vmov 0   ;;  %vm374_vm1 = vcmask 261120   ;;  %vm4926_vm2 = vmmov 0   ;;  %s6323_s1 = inlined_call_operand.vmem [shape: bf16[64,32], index: 1, kind: input, shape index: {}]   ;;  %s6324_s0 = inlined_call_operand.vmem [shape: bf16[128,64], index: 0, kind: input, shape index: {}]   ;;  %s6325_s3 = inlined_call_operand.vmem [shape: bf16[32,1024], index: 3, kind: input, shape index: {}]   ;;  %s6326_s8 = inlined_call_operand.vmem [shape: f32[1,1536], index: 8, kind: input, shape index: {}]   ;;  %s6327_s2 = inlined_call_operand.vmem [shape: bf16[16,18,128], index: 2, kind: input, shape index: {}]   ;;  %s6328_s5 = inlined_call_operand.vmem [shape: bf16[64,576], index: 5, kind: input, shape index: {}]   ;;  %s6329_s4 = inlined_call_operand.vmem [shape: bf16[9,2,18], index: 4, kind: input, shape index: {}]   ;;  %s6330_s6 = inlined_call_operand.vmem [shape: bf16[64,1024], index: 6, kind: input, shape index: {}]   ;;  %s6331_s7 = inlined_call_operand.vmem [shape: bf16[512,128], index: 7, kind: input, shape index: {}]   ;;  %s6332_s9 = inlined_call_operand.vmem [shape: f32[2,128], index: 9, kind: output, shape index: {}]  }
   0x1   :  { %v4815_v0 = vld [vmem:[%s6323_s1] sm:$0xff]   ;;  %v4816_v1 = vld [vmem:[%s6323_s1 + $0x8] sm:$0xff]   ;;  %v4817_v2 = vld [vmem:[%s6323_s1 + $0x10] sm:$0xff]   ;;  %431 = vmatprep.mubr.bf16.mxu1 %v6333_v28  ;;  %vm2505_vm3 = vcmask 1040384   ;;  %vm2501_vm4 = vcmask 146432   ;;  %vm3812_vm9 = vcmask 1041408  }
   0x2   :  { %4383 = vmatprep.subr.bf16.mxu0 %v4815_v0  ;;  %v4819_v3 = vld [vmem:[%s6324_s0] sm:$0xff]   ;;  %v4818_v4 = vld [vmem:[%s6323_s1 + $0x18] sm:$0xff]   ;;  %v4820_v5 = vld [vmem:[%s6324_s0 + $0x8] sm:$0xff]  }
   0x3   :  { %4384 = vmatpush3.bf16.msra.mxu0 %v4815_v0  ;;  %4391 = vmatprep.mubr.msk.bf16.mxu0 %vm132_vm0, %v4819_v3  ;;  %v4821_v6 = vld [vmem:[%s6324_s0 + $0x10] sm:$0xff]   ;;  %v4822_v7 = vld [vmem:[%s6324_s0 + $0x18] sm:$0xff]   ;;  %v4823_v8 = vld [vmem:[%s6324_s0 + $0x20] sm:$0xff]  }
   0x4   :  { %4385 = vmatprep.subr.bf16.mxu0 %v4816_v1  ;;  %v4824_v9 = vld [vmem:[%s6324_s0 + $0x28] sm:$0xff]   ;;  %v4825_v10 = vld [vmem:[%s6324_s0 + $0x30] sm:$0xff]   ;;  %v4826_v11 = vld [vmem:[%s6324_s0 + $0x38] sm:$0xff]  }
   0x5   :  { %v278_v12 = vld [vmem:[%s6325_s3] sm:$0xff]  ;;  %v279_v14 = vld [vmem:[%s6325_s3 + $0x8] sm:$0xff]  ;;  %v280_v29 = vld [vmem:[%s6325_s3 + $0x10] sm:$0xff] }
   0x6   :  { %v282_v13 = vld [vmem:[%s6325_s3 + $0x20] sm:$0xff]  ;;  %v283_v16 = vld [vmem:[%s6325_s3 + $0x28] sm:$0xff]  ;;  %v284_v30 = vld [vmem:[%s6325_s3 + $0x30] sm:$0xff] }
   0x7   :  { %4386 = vmatpush3.bf16.msra.mxu0 %v4816_v1  ;;  %v3852_v15 = vcombine.high %v278_v12, %v282_v13  ;;  %v3853_v17 = vcombine.low %v279_v14, %v283_v16  ;;  %v3854_v18 = vcombine.high %v279_v14, %v283_v16  ;;  %v3851_v19 = vcombine.low %v278_v12, %v282_v13  ;;  %v286_v20 = vld [vmem:[%s6325_s3 + $0x40] sm:$0xff]  ;;  %v287_v22 = vld [vmem:[%s6325_s3 + $0x48] sm:$0xff]  ;;  %v281_v33 = vld [vmem:[%s6325_s3 + $0x18] sm:$0xff] }
   0x8   :  { %4387 = vmatprep.subr.bf16.mxu0 %v4817_v2  ;;  %v290_v21 = vld [vmem:[%s6325_s3 + $0x60] sm:$0xff]  ;;  %v291_v24 = vld [vmem:[%s6325_s3 + $0x68] sm:$0xff]  ;;  %v3855_v31 = vcombine.low %v280_v29, %v284_v30  ;;  %v3856_v32 = vcombine.high %v280_v29, %v284_v30  ;;  %v285_v34 = vld [vmem:[%s6325_s3 + $0x38] sm:$0xff] }
   0x9   :  { %399 = vmatprep.subr.bf16.mxu1 %v3852_v15  ;;  %v3860_v23 = vcombine.high %v286_v20, %v290_v21  ;;  %v3861_v25 = vcombine.low %v287_v22, %v291_v24  ;;  %v3862_v26 = vcombine.high %v287_v22, %v291_v24  ;;  %v3859_v27 = vcombine.low %v286_v20, %v290_v21  ;;  %v5062_v37 = vld [vmem:[%s6326_s8] ss:$0 sm:$0xff]  ;;  %v288_v48 = vld [vmem:[%s6325_s3 + $0x50] sm:$0xff]  ;;  %v289_v52 = vld [vmem:[%s6325_s3 + $0x58] sm:$0xff] }
   0xa   :  { %400 = vmatpush1.bf16.msra.mxu1 %v3851_v19  ;;  %v3858_v35 = vcombine.high %v281_v33, %v285_v34  ;;  %v3857_v36 = vcombine.low %v281_v33, %v285_v34  ;;  %v292_v51 = vld [vmem:[%s6325_s3 + $0x70] sm:$0xff]  ;;  %v293_v53 = vld [vmem:[%s6325_s3 + $0x78] sm:$0xff]  ;;  %s4924_s3 = smov 64  }
   0xb   :  { %4388 = vmatpush3.bf16.msra.mxu0 %v4817_v2  ;;  %401 = vmatprep.subr.bf16.mxu1 %v3860_v23  ;;  %v3864_v59 = vcombine.high %v288_v48, %v292_v51  ;;  %v3866_v60 = vcombine.high %v289_v52, %v293_v53 }
   0xc   :  { %4389 = vmatprep.subr.bf16.mxu0 %v4818_v4 }
   0xe   :  { %402 = vmatpush1.bf16.msra.mxu1 %v3859_v27 }
   0xf   :  { %4390 = vmatpush3.bf16.msra.mxu0 %v4818_v4  ;;  %625 = vmatprep.subr.bf16.mxu1 %v3856_v32  ;;  %v3863_v4 = vcombine.low %v288_v48, %v292_v51 }
  0x10   :  { %512 = vmatprep.subr.bf16.mxu0 %v3854_v18 }
  0x12   :  { %4392 = vmatmul.mubr.msk.bf16.vlgmr.msra.gmra.mrb[0].mxu0 %vm132_vm0, %v4820_v5  ;;  %v3865_v5 = vcombine.low %v289_v52, %v293_v53 }
  0x13   :  { %4395 = vmatprep.mubr.msk.bf16.mxu0 %vm132_vm0, %v4821_v6  ;;  %513 = vmatpush1.bf16.msra.mxu0 %v3853_v17 }
  0x14   :  { %514 = vmatprep.subr.bf16.mxu0 %v3862_v26 }
  0x17   :  { %515 = vmatpush1.bf16.msra.mxu0 %v3861_v25 }
  0x18   :  { %738 = vmatprep.subr.bf16.mxu0 %v3858_v35 }
  0x1a   :  { %4396 = vmatmul.mubr.msk.bf16.gmra.mrb[4].mxu0 %vm132_vm0, %v4822_v7 }
  0x1b   :  { %4399 = vmatprep.mubr.msk.bf16.mxu0 %vm132_vm0, %v4823_v8 }
  0x22   :  { %4400 = vmatmul.mubr.msk.bf16.gmra.mrb[8].mxu0 %vm132_vm0, %v4824_v9 }
  0x23   :  { %4403 = vmatprep.mubr.msk.bf16.mxu0 %vm132_vm0, %v4825_v10 }
  0x2a   :  { %4404 = vmatmul.mubr.msk.bf16.gmra.mrb[12].mxu0 %vm132_vm0, %v4826_v11 }
  0x2b   :  { %544 = vmatprep.mubr.bf16.mxu0 %v6333_v28 }
  0xe5   :  { %v4393_v38 = vpop.f32.mrb[0].mxu0 }
  0xe6   :  { %v200_v39 = vadd.f32 %v4393_v38, %v5062_v37  ;;  %v191_v40 = vpop.f32.mrb[1].mxu0 }
  0xe7   :  { %v192_v41 = vadd.f32 %v5062_v37, %v191_v40  ;;  %v4394_v42 = vpop.f32.mrb[2].mxu0 }
  0xe8   :  { %v203_v43 = vadd.f32 %v4394_v42, %v5062_v37  ;;  %v194_v44 = vpop.f32.mrb[3].mxu0  ;;  %v256_v46 = vmax.f32 %v200_v39, 0.0 }
  0xe9   :  { %v195_v45 = vadd.f32 %v5062_v37, %v194_v44  ;;  %v254_v49 = vmax.f32 %v192_v41, 0.0 }
  0xea   :  { %v257_v47 = vmax.f32 %v203_v43, 0.0 }
  0xeb   :  { %v255_v50 = vmax.f32 %v195_v45, 0.0 }
  0xec   :  { %v5080_v54 = vpack.c.bf16 %v257_v47, %v256_v46 }
  0xed   :  { %v5082_v55 = vpack.c.bf16 %v255_v50, %v254_v49  ;;  %v4397_v56 = vpop.f32.mrb[4].mxu0 }
  0xee   :  { %v216_v57 = vadd.f32 %v4397_v56, %v5062_v37  ;;  %v207_v58 = vpop.f32.mrb[5].mxu0 }
  0xef   :  { %3867 = vmatmul.mubr.msk.bf16.vlgmr.msra.gmra.mrb[0].mxu1 %vm374_vm1, %v5082_v55  ;;  %3875 = vmatmul.mubr.msk.bf16.vlgmr.msra.gmra.mrb[16].mxu0 %vm374_vm1, %v5082_v55  ;;  %v208_v61 = vadd.f32 %v5062_v37, %v207_v58  ;;  %v4398_v62 = vpop.f32.mrb[6].mxu0 }
  0xf0   :  { %v260_v63 = vmax.f32 %v216_v57, 0.0  ;;  %v219_v0 = vadd.f32 %v4398_v62, %v5062_v37  ;;  %v210_v1 = vpop.f32.mrb[7].mxu0  ;;  %441 = vmatprep.mubr.bf16.mxu1 %v6333_v28  ;;  %554 = vmatprep.mubr.bf16.mxu0 %v6333_v28 }
  0xf1   :  { %v258_v2 = vmax.f32 %v208_v61, 0.0  ;;  %v211_v3 = vadd.f32 %v5062_v37, %v210_v1  ;;  %626 = vmatpush1.bf16.msra.mxu1 %v3855_v31  ;;  %739 = vmatpush1.bf16.msra.mxu0 %v3857_v36 }
  0xf2   :  { %v261_v6 = vmax.f32 %v219_v0, 0.0  ;;  %627 = vmatprep.subr.bf16.mxu1 %v3864_v59  ;;  %740 = vmatprep.subr.bf16.mxu0 %v3866_v60 }
  0xf3   :  { %v259_v7 = vmax.f32 %v211_v3, 0.0 }
  0xf4   :  { %v5094_v8 = vpack.c.bf16 %v261_v6, %v260_v63 }
  0xf5   :  { %v5096_v9 = vpack.c.bf16 %v259_v7, %v258_v2  ;;  %v4401_v10 = vpop.f32.mrb[8].mxu0  ;;  %628 = vmatpush1.bf16.msra.mxu1 %v3863_v4  ;;  %741 = vmatpush1.bf16.msra.mxu0 %v3865_v5 }
  0xf6   :  { %v232_v11 = vadd.f32 %v4401_v10, %v5062_v37  ;;  %v223_v12 = vpop.f32.mrb[9].mxu0 }
  0xf7   :  { %3868 = vmatmul.mubr.msk.bf16.gmra.mrb[4].mxu1 %vm374_vm1, %v5080_v54  ;;  %3876 = vmatmul.mubr.msk.bf16.gmra.mrb[20].mxu0 %vm374_vm1, %v5080_v54  ;;  %v224_v13 = vadd.f32 %v5062_v37, %v223_v12  ;;  %v4402_v14 = vpop.f32.mrb[10].mxu0 }
  0xf8   :  { %451 = vmatprep.mubr.bf16.mxu1 %v6333_v28  ;;  %564 = vmatprep.mubr.bf16.mxu0 %v6333_v28  ;;  %v264_v15 = vmax.f32 %v232_v11, 0.0  ;;  %v235_v16 = vadd.f32 %v4402_v14, %v5062_v37  ;;  %v226_v17 = vpop.f32.mrb[11].mxu0 }
  0xf9   :  { %v262_v18 = vmax.f32 %v224_v13, 0.0  ;;  %v227_v19 = vadd.f32 %v5062_v37, %v226_v17 }
  0xfa   :  { %v265_v20 = vmax.f32 %v235_v16, 0.0 }
  0xfb   :  { %v263_v21 = vmax.f32 %v227_v19, 0.0 }
  0xfc   :  { %v275_v22 = vpack.c.bf16 %v265_v20, %v264_v15 }
  0xfd   :  { %v274_v23 = vpack.c.bf16 %v263_v21, %v262_v18  ;;  %v4405_v24 = vpop.f32.mrb[12].mxu0 }
  0xfe   :  { %v248_v25 = vadd.f32 %v4405_v24, %v5062_v37  ;;  %v239_v26 = vpop.f32.mrb[13].mxu0 }
  0xff   :  { %3869 = vmatmul.mubr.msk.bf16.gmra.mrb[8].mxu1 %vm374_vm1, %v5096_v9  ;;  %3877 = vmatmul.mubr.msk.bf16.gmra.mrb[24].mxu0 %vm374_vm1, %v5096_v9  ;;  %v240_v27 = vadd.f32 %v5062_v37, %v239_v26  ;;  %v4406_v29 = vpop.f32.mrb[14].mxu0 }
 0x100   :  { %461 = vmatprep.mubr.bf16.mxu1 %v6333_v28  ;;  %574 = vmatprep.mubr.bf16.mxu0 %v6333_v28  ;;  %v268_v30 = vmax.f32 %v248_v25, 0.0  ;;  %v251_v31 = vadd.f32 %v4406_v29, %v5062_v37  ;;  %v242_v32 = vpop.f32.mrb[15].mxu0 }
 0x101   :  { %v266_v33 = vmax.f32 %v240_v27, 0.0  ;;  %v243_v34 = vadd.f32 %v5062_v37, %v242_v32 }
 0x102   :  { %v269_v35 = vmax.f32 %v251_v31, 0.0 }
 0x103   :  { %v267_v36 = vmax.f32 %v243_v34, 0.0 }
 0x104   :  { %v277_v38 = vpack.c.bf16 %v269_v35, %v268_v30 }
 0x105   :  { %v276_v39 = vpack.c.bf16 %v267_v36, %v266_v33 }
 0x107   :  { %3870 = vmatmul.mubr.msk.bf16.gmra.mrb[12].mxu1 %vm374_vm1, %v5094_v8  ;;  %3878 = vmatmul.mubr.msk.bf16.gmra.mrb[28].mxu0 %vm374_vm1, %v5094_v8 }
 0x108   :  { %471 = vmatprep.mubr.bf16.mxu1 %v6333_v28  ;;  %584 = vmatprep.mubr.bf16.mxu0 %v6333_v28 }
 0x10f   :  { %3871 = vmatmul.mubr.msk.bf16.gmra.mrb[16].mxu1 %vm374_vm1, %v274_v23  ;;  %3879 = vmatmul.mubr.msk.bf16.gmra.mrb[32].mxu0 %vm374_vm1, %v274_v23 }
 0x110   :  { %481 = vmatprep.mubr.bf16.mxu1 %v6333_v28  ;;  %594 = vmatprep.mubr.bf16.mxu0 %v6333_v28 }
 0x117   :  { %3872 = vmatmul.mubr.msk.bf16.gmra.mrb[20].mxu1 %vm374_vm1, %v275_v22  ;;  %3880 = vmatmul.mubr.msk.bf16.gmra.mrb[36].mxu0 %vm374_vm1, %v275_v22 }
 0x118   :  { %491 = vmatprep.mubr.bf16.mxu1 %v6333_v28  ;;  %604 = vmatprep.mubr.bf16.mxu0 %v6333_v28 }
 0x11f   :  { %3873 = vmatmul.mubr.msk.bf16.gmra.mrb[24].mxu1 %vm374_vm1, %v276_v39  ;;  %3881 = vmatmul.mubr.msk.bf16.gmra.mrb[40].mxu0 %vm374_vm1, %v276_v39 }
 0x120   :  { %501 = vmatprep.mubr.bf16.mxu1 %v6333_v28  ;;  %614 = vmatprep.mubr.bf16.mxu0 %v6333_v28 }
 0x127   :  { %3874 = vmatmul.mubr.msk.bf16.gmra.mrb[28].mxu1 %vm374_vm1, %v277_v38  ;;  %3882 = vmatmul.mubr.msk.bf16.gmra.mrb[44].mxu0 %vm374_vm1, %v277_v38 }
 0x128   :  { %657 = vmatprep.mubr.bf16.mxu1 %v6333_v28  ;;  %770 = vmatprep.mubr.bf16.mxu0 %v6333_v28 }
 0x12f   :  { %3883 = vmatmul.mubr.msk.bf16.vlgmr.msra.gmra.mrb[32].mxu1 %vm374_vm1, %v5082_v55  ;;  %3891 = vmatmul.mubr.msk.bf16.vlgmr.msra.gmra.mrb[48].mxu0 %vm374_vm1, %v5082_v55 }
 0x130   :  { %667 = vmatprep.mubr.bf16.mxu1 %v6333_v28  ;;  %780 = vmatprep.mubr.bf16.mxu0 %v6333_v28 }
 0x137   :  { %3884 = vmatmul.mubr.msk.bf16.gmra.mrb[36].mxu1 %vm374_vm1, %v5080_v54  ;;  %3892 = vmatmul.mubr.msk.bf16.gmra.mrb[52].mxu0 %vm374_vm1, %v5080_v54 }
 0x138   :  { %677 = vmatprep.mubr.bf16.mxu1 %v6333_v28  ;;  %790 = vmatprep.mubr.bf16.mxu0 %v6333_v28 }
 0x13f   :  { %3885 = vmatmul.mubr.msk.bf16.gmra.mrb[40].mxu1 %vm374_vm1, %v5096_v9  ;;  %3893 = vmatmul.mubr.msk.bf16.gmra.mrb[56].mxu0 %vm374_vm1, %v5096_v9 }
 0x140   :  { %687 = vmatprep.mubr.bf16.mxu1 %v6333_v28  ;;  %800 = vmatprep.mubr.bf16.mxu0 %v6333_v28 }
 0x147   :  { %3886 = vmatmul.mubr.msk.bf16.gmra.mrb[44].mxu1 %vm374_vm1, %v5094_v8  ;;  %3894 = vmatmul.mubr.msk.bf16.gmra.mrb[60].mxu0 %vm374_vm1, %v5094_v8 }
 0x148   :  { %697 = vmatprep.mubr.bf16.mxu1 %v6333_v28  ;;  %810 = vmatprep.mubr.bf16.mxu0 %v6333_v28 }
 0x14f   :  { %3887 = vmatmul.mubr.msk.bf16.gmra.mrb[48].mxu1 %vm374_vm1, %v274_v23  ;;  %3895 = vmatmul.mubr.msk.bf16.gmra.mrb[64].mxu0 %vm374_vm1, %v274_v23 }
 0x150   :  { %707 = vmatprep.mubr.bf16.mxu1 %v6333_v28  ;;  %820 = vmatprep.mubr.bf16.mxu0 %v6333_v28 }
 0x157   :  { %3888 = vmatmul.mubr.msk.bf16.gmra.mrb[52].mxu1 %vm374_vm1, %v275_v22  ;;  %3896 = vmatmul.mubr.msk.bf16.gmra.mrb[68].mxu0 %vm374_vm1, %v275_v22 }
 0x158   :  { %717 = vmatprep.mubr.bf16.mxu1 %v6333_v28  ;;  %830 = vmatprep.mubr.bf16.mxu0 %v6333_v28 }
 0x15f   :  { %3889 = vmatmul.mubr.msk.bf16.gmra.mrb[56].mxu1 %vm374_vm1, %v276_v39  ;;  %3897 = vmatmul.mubr.msk.bf16.gmra.mrb[72].mxu0 %vm374_vm1, %v276_v39 }
 0x160   :  { %727 = vmatprep.mubr.bf16.mxu1 %v6333_v28  ;;  %840 = vmatprep.mubr.bf16.mxu0 %v6333_v28 }
 0x167   :  { %3890 = vmatmul.mubr.msk.bf16.gmra.mrb[60].mxu1 %vm374_vm1, %v277_v38  ;;  %3898 = vmatmul.mubr.msk.bf16.gmra.mrb[76].mxu0 %vm374_vm1, %v277_v38 }
 0x1c2   :  { %v433_v37 = vpop.f32.mrb[0].mxu1  ;;  %v546_v40 = vpop.f32.mrb[16].mxu0 }
 0x1c3   :  { %v435_v41 = vpop.f32.mrb[1].mxu1  ;;  %v548_v42 = vpop.f32.mrb[17].mxu0 }
 0x1c4   :  { %v437_v43 = vpop.f32.mrb[2].mxu1  ;;  %v550_v44 = vpop.f32.mrb[18].mxu0 }
 0x1c5   :  { %v5178_v45 = vpack.c.bf16 %v437_v43, %v433_v37  ;;  %v5180_v46 = vpack.c.bf16 %v550_v44, %v546_v40  ;;  %v439_v47 = vpop.f32.mrb[3].mxu1  ;;  %v552_v48 = vpop.f32.mrb[19].mxu0 }
 0x1c6   :  { %v5182_v49 = vpack.c.bf16 %v439_v47, %v435_v41  ;;  %v5184_v50 = vpack.c.bf16 %v552_v48, %v548_v42 }
 0x1c7   :  { %940 = vrot.lane.b32.xlu0 %v5178_v45, %s4924_s3 }
 0x1ca   :  { %v443_v51 = vpop.f32.mrb[4].mxu1  ;;  %v556_v52 = vpop.f32.mrb[20].mxu0 }
 0x1cb   :  { %v445_v53 = vpop.f32.mrb[5].mxu1  ;;  %v558_v54 = vpop.f32.mrb[21].mxu0 }
 0x1cc   :  { %v447_v55 = vpop.f32.mrb[6].mxu1  ;;  %v560_v56 = vpop.f32.mrb[22].mxu0 }
 0x1cd   :  { %v5188_v57 = vpack.c.bf16 %v447_v55, %v443_v51  ;;  %v5190_v58 = vpack.c.bf16 %v560_v56, %v556_v52  ;;  %v449_v59 = vpop.f32.mrb[7].mxu1  ;;  %v562_v60 = vpop.f32.mrb[23].mxu0 }
 0x1ce   :  { %v5192_v61 = vpack.c.bf16 %v449_v59, %v445_v53  ;;  %v5194_v62 = vpack.c.bf16 %v562_v60, %v558_v54 }
 0x1cf   :  { %942 = vrot.lane.b32.xlu0 %v5188_v57, %s4924_s3 }
 0x1d2   :  { %v453_v63 = vpop.f32.mrb[8].mxu1  ;;  %v566_v0 = vpop.f32.mrb[24].mxu0 }
 0x1d3   :  { %v455_v1 = vpop.f32.mrb[9].mxu1  ;;  %v568_v2 = vpop.f32.mrb[25].mxu0 }
 0x1d4   :  { %v457_v3 = vpop.f32.mrb[10].mxu1  ;;  %v570_v4 = vpop.f32.mrb[26].mxu0 }
 0x1d5   :  { %v5198_v5 = vpack.c.bf16 %v457_v3, %v453_v63  ;;  %v5200_v6 = vpack.c.bf16 %v570_v4, %v566_v0  ;;  %v459_v7 = vpop.f32.mrb[11].mxu1  ;;  %v572_v8 = vpop.f32.mrb[27].mxu0 }
 0x1d6   :  { %v5202_v9 = vpack.c.bf16 %v459_v7, %v455_v1  ;;  %v5204_v10 = vpack.c.bf16 %v572_v8, %v568_v2  ;;  %v4827_v2 = vld [vmem:[%s6327_s2 + $0xc] sm:$0xff]  }
 0x1d7   :  { %944 = vrot.lane.b32.xlu1 %v5198_v5, %s4924_s3  ;;  %4423 = vmatprep.mubr.bf16.mxu1 %v4827_v2 }
 0x1da   :  { %v463_v11 = vpop.f32.mrb[12].mxu1  ;;  %v576_v12 = vpop.f32.mrb[28].mxu0 }
 0x1db   :  { %v465_v13 = vpop.f32.mrb[13].mxu1  ;;  %v578_v14 = vpop.f32.mrb[29].mxu0 }
 0x1dc   :  { %v467_v15 = vpop.f32.mrb[14].mxu1  ;;  %v580_v16 = vpop.f32.mrb[30].mxu0 }
 0x1dd   :  { %v5208_v17 = vpack.c.bf16 %v467_v15, %v463_v11  ;;  %v5210_v18 = vpack.c.bf16 %v580_v16, %v576_v12  ;;  %v469_v19 = vpop.f32.mrb[15].mxu1  ;;  %v582_v20 = vpop.f32.mrb[31].mxu0 }
 0x1de   :  { %v5212_v21 = vpack.c.bf16 %v469_v19, %v465_v13  ;;  %v5214_v22 = vpack.c.bf16 %v582_v20, %v578_v14 }
 0x1df   :  { %946 = vrot.lane.b32.xlu1 %v5208_v17, %s4924_s3 }
 0x1e2   :  { %v473_v23 = vpop.f32.mrb[16].mxu1  ;;  %v586_v24 = vpop.f32.mrb[32].mxu0 }
 0x1e3   :  { %v475_v25 = vpop.f32.mrb[17].mxu1  ;;  %v588_v26 = vpop.f32.mrb[33].mxu0 }
 0x1e4   :  { %v477_v27 = vpop.f32.mrb[18].mxu1  ;;  %v590_v29 = vpop.f32.mrb[34].mxu0 }
 0x1e5   :  { %v5218_v30 = vpack.c.bf16 %v477_v27, %v473_v23  ;;  %v5220_v31 = vpack.c.bf16 %v590_v29, %v586_v24  ;;  %v479_v32 = vpop.f32.mrb[19].mxu1  ;;  %v592_v33 = vpop.f32.mrb[35].mxu0 }
 0x1e6   :  { %v5222_v34 = vpack.c.bf16 %v479_v32, %v475_v25  ;;  %v5224_v35 = vpack.c.bf16 %v592_v33, %v588_v26 }
 0x1e7   :  { %948 = vrot.lane.b32.xlu0 %v5218_v30, %s4924_s3 }
 0x1e8   :  { %6363 = vst [vmem:[#allocation2_spill] sm:$0xff] %v5224_v35 }
 0x1ea   :  { %v483_v36 = vpop.f32.mrb[20].mxu1  ;;  %v596_v38 = vpop.f32.mrb[36].mxu0 }
 0x1eb   :  { %v485_v39 = vpop.f32.mrb[21].mxu1  ;;  %v598_v37 = vpop.f32.mrb[37].mxu0 }
 0x1ec   :  { %v487_v40 = vpop.f32.mrb[22].mxu1  ;;  %v600_v41 = vpop.f32.mrb[38].mxu0 }
 0x1ed   :  { %v5228_v42 = vpack.c.bf16 %v487_v40, %v483_v36  ;;  %v5230_v43 = vpack.c.bf16 %v600_v41, %v596_v38  ;;  %v489_v44 = vpop.f32.mrb[23].mxu1  ;;  %v602_v47 = vpop.f32.mrb[39].mxu0 }
 0x1ee   :  { %v5232_v48 = vpack.c.bf16 %v489_v44, %v485_v39  ;;  %v5234_v51 = vpack.c.bf16 %v602_v47, %v598_v37 }
 0x1ef   :  { %950 = vrot.lane.b32.xlu1 %v5228_v42, %s4924_s3 }
 0x1f0   :  { %6364 = vst [vmem:[#allocation3_spill] sm:$0xff] %v5234_v51 }
 0x1f2   :  { %v493_v52 = vpop.f32.mrb[24].mxu1  ;;  %v606_v53 = vpop.f32.mrb[40].mxu0 }
 0x1f3   :  { %v495_v54 = vpop.f32.mrb[25].mxu1  ;;  %v608_v55 = vpop.f32.mrb[41].mxu0 }
 0x1f4   :  { %v497_v56 = vpop.f32.mrb[26].mxu1  ;;  %v610_v59 = vpop.f32.mrb[42].mxu0 }
 0x1f5   :  { %v5238_v60 = vpack.c.bf16 %v497_v56, %v493_v52  ;;  %v5240_v63 = vpack.c.bf16 %v610_v59, %v606_v53  ;;  %v499_v0 = vpop.f32.mrb[27].mxu1  ;;  %v612_v1 = vpop.f32.mrb[43].mxu0 }
 0x1f6   :  { %v5245_v3 = vpack.c.bf16 %v499_v0, %v495_v54  ;;  %v5247_v4 = vpack.c.bf16 %v612_v1, %v608_v55 }
 0x1f7   :  { %952 = vrot.lane.b32.xlu0 %v5238_v60, %s4924_s3 }
 0x1f8   :  { %6365 = vst [vmem:[#allocation4_spill] sm:$0xff] %v5247_v4 }
 0x1fa   :  { %v503_v7 = vpop.f32.mrb[28].mxu1  ;;  %v616_v8 = vpop.f32.mrb[44].mxu0 }
 0x1fb   :  { %v618_v11 = vpop.f32.mrb[45].mxu0  ;;  %1038 = vrot.lane.b32.xlu0 %v5182_v49, %s4924_s3  ;;  %v505_v12 = vpop.f32.mrb[29].mxu1 }
 0x1fc   :  { %v507_v13 = vpop.f32.mrb[30].mxu1  ;;  %v620_v14 = vpop.f32.mrb[46].mxu0 }
 0x1fd   :  { %v5253_v15 = vpack.c.bf16 %v507_v13, %v503_v7  ;;  %v5255_v16 = vpack.c.bf16 %v620_v14, %v616_v8  ;;  %v509_v19 = vpop.f32.mrb[31].mxu1  ;;  %v622_v20 = vpop.f32.mrb[47].mxu0 }
 0x1fe   :  { %v5257_v23 = vpack.c.bf16 %v509_v19, %v505_v12  ;;  %v5259_v24 = vpack.c.bf16 %v622_v20, %v618_v11 }
 0x1ff   :  { %1042 = vrot.lane.b32.xlu0 %v5202_v9, %s4924_s3  ;;  %954 = vrot.lane.b32.xlu1 %v5253_v15, %s4924_s3 }
 0x200   :  { %6366 = vst [vmem:[#allocation5_spill] sm:$0xff] %v5259_v24 }
 0x202   :  { %v659_v25 = vpop.f32.mrb[32].mxu1  ;;  %v772_v26 = vpop.f32.mrb[48].mxu0 }
 0x203   :  { %v774_v27 = vpop.f32.mrb[49].mxu0  ;;  %1046 = vrot.lane.b32.xlu0 %v5222_v34, %s4924_s3  ;;  %1040 = vrot.lane.b32.xlu1 %v5192_v61, %s4924_s3  ;;  %v661_v29 = vpop.f32.mrb[33].mxu1 }
 0x204   :  { %v663_v32 = vpop.f32.mrb[34].mxu1  ;;  %v776_v33 = vpop.f32.mrb[50].mxu0 }
 0x205   :  { %v5269_v36 = vpack.c.bf16 %v663_v32, %v659_v25  ;;  %v5271_v38 = vpack.c.bf16 %v776_v33, %v772_v26  ;;  %v665_v39 = vpop.f32.mrb[35].mxu1  ;;  %v778_v37 = vpop.f32.mrb[51].mxu0 }
 0x206   :  { %v5273_v40 = vpack.c.bf16 %v665_v39, %v661_v29  ;;  %v5275_v41 = vpack.c.bf16 %v778_v37, %v774_v27 }
 0x207   :  { %1050 = vrot.lane.b32.xlu0 %v5245_v3, %s4924_s3  ;;  %1044 = vrot.lane.b32.xlu1 %v5212_v21, %s4924_s3 }
 0x208   :  { %6367 = vst [vmem:[#allocation6_spill] sm:$0xff] %v5273_v40 }
 0x20a   :  { %v669_v44 = vpop.f32.mrb[36].mxu1  ;;  %v782_v47 = vpop.f32.mrb[52].mxu0 }
 0x20b   :  { %v784_v52 = vpop.f32.mrb[53].mxu0  ;;  %1136 = vrot.lane.b32.xlu0 %v5180_v46, %s4924_s3  ;;  %1048 = vrot.lane.b32.xlu1 %v5232_v48, %s4924_s3  ;;  %v671_v53 = vpop.f32.mrb[37].mxu1 }
 0x20c   :  { %v673_v54 = vpop.f32.mrb[38].mxu1  ;;  %v786_v55 = vpop.f32.mrb[54].mxu0 }
 0x20d   :  { %v5285_v56 = vpack.c.bf16 %v673_v54, %v669_v44  ;;  %v5287_v59 = vpack.c.bf16 %v786_v55, %v782_v47  ;;  %v675_v0 = vpop.f32.mrb[39].mxu1  ;;  %v788_v1 = vpop.f32.mrb[55].mxu0 }
 0x20e   :  { %v5289_v2 = vpack.c.bf16 %v675_v0, %v671_v53  ;;  %v5291_v7 = vpack.c.bf16 %v788_v1, %v784_v52  ;;  %v4831_v1 = vld [vmem:[%s6327_s2 + $0x3c] sm:$0xff]  }
 0x20f   :  { %6368 = vst [vmem:[#allocation7_spill] sm:$0xff] %v5285_v56  ;;  %1138 = vrot.lane.b32.xlu0 %v5190_v58, %s4924_s3  ;;  %1052 = vrot.lane.b32.xlu1 %v5257_v23, %s4924_s3 }
 0x210   :  { %6369 = vst [vmem:[#allocation8_spill] sm:$0xff] %v5289_v2  ;;  %4463 = vmatprep.mubr.bf16.mxu0 %v4831_v1 }
 0x212   :  { %v679_v8 = vpop.f32.mrb[40].mxu1  ;;  %v792_v11 = vpop.f32.mrb[56].mxu0 }
 0x213   :  { %v794_v12 = vpop.f32.mrb[57].mxu0  ;;  %1140 = vrot.lane.b32.xlu0 %v5200_v6, %s4924_s3  ;;  %1234 = vrot.lane.b32.xlu1 %v5184_v50, %s4924_s3  ;;  %v681_v13 = vpop.f32.mrb[41].mxu1 }
 0x214   :  { %v683_v14 = vpop.f32.mrb[42].mxu1  ;;  %v796_v19 = vpop.f32.mrb[58].mxu0 }
 0x215   :  { %v5301_v20 = vpack.c.bf16 %v683_v14, %v679_v8  ;;  %v5303_v25 = vpack.c.bf16 %v796_v19, %v792_v11  ;;  %v685_v26 = vpop.f32.mrb[43].mxu1  ;;  %v798_v27 = vpop.f32.mrb[59].mxu0 }
 0x216   :  { %v5305_v29 = vpack.c.bf16 %v685_v26, %v681_v13  ;;  %v5307_v32 = vpack.c.bf16 %v798_v27, %v794_v12 }
 0x217   :  { %6370 = vst [vmem:[#allocation9_spill] sm:$0xff] %v5301_v20  ;;  %1142 = vrot.lane.b32.xlu0 %v5210_v18, %s4924_s3  ;;  %1236 = vrot.lane.b32.xlu1 %v5194_v62, %s4924_s3 }
 0x21a   :  { %v689_v33 = vpop.f32.mrb[44].mxu1  ;;  %v802_v39 = vpop.f32.mrb[60].mxu0 }
 0x21b   :  { %v804_v37 = vpop.f32.mrb[61].mxu0  ;;  %1144 = vrot.lane.b32.xlu0 %v5220_v31, %s4924_s3  ;;  %1238 = vrot.lane.b32.xlu1 %v5204_v10, %s4924_s3  ;;  %v691_v44 = vpop.f32.mrb[45].mxu1 }
 0x21c   :  { %v693_v47 = vpop.f32.mrb[46].mxu1  ;;  %v806_v52 = vpop.f32.mrb[62].mxu0 }
 0x21d   :  { %v5317_v53 = vpack.c.bf16 %v693_v47, %v689_v33  ;;  %v5319_v54 = vpack.c.bf16 %v806_v52, %v802_v39  ;;  %v695_v55 = vpop.f32.mrb[47].mxu1  ;;  %v808_v0 = vpop.f32.mrb[63].mxu0 }
 0x21e   :  { %v5324_v8 = vpack.c.bf16 %v695_v55, %v691_v44  ;;  %v5326_v11 = vpack.c.bf16 %v808_v0, %v804_v37 }
 0x21f   :  { %6371 = vst [vmem:[#allocation10_spill] sm:$0xff] %v5317_v53  ;;  %1146 = vrot.lane.b32.xlu0 %v5230_v43, %s4924_s3  ;;  %1240 = vrot.lane.b32.xlu1 %v5214_v22, %s4924_s3 }
 0x220   :  { %6372 = vst [vmem:[#allocation11_spill] sm:$0xff] %v5326_v11 }
 0x222   :  { %v699_v12 = vpop.f32.mrb[48].mxu1  ;;  %v812_v13 = vpop.f32.mrb[64].mxu0 }
 0x223   :  { %v814_v14 = vpop.f32.mrb[65].mxu0  ;;  %1148 = vrot.lane.b32.xlu0 %v5240_v63, %s4924_s3  ;;  %1242 = vrot.lane.b32.xlu1 %v5224_v35, %s4924_s3  ;;  %v701_v19 = vpop.f32.mrb[49].mxu1 }
 0x224   :  { %v703_v26 = vpop.f32.mrb[50].mxu1  ;;  %v816_v27 = vpop.f32.mrb[66].mxu0 }
 0x225   :  { %v5336_v33 = vpack.c.bf16 %v703_v26, %v699_v12  ;;  %v5338_v39 = vpack.c.bf16 %v816_v27, %v812_v13  ;;  %v705_v37 = vpop.f32.mrb[51].mxu1  ;;  %v818_v44 = vpop.f32.mrb[67].mxu0 }
 0x226   :  { %v5340_v47 = vpack.c.bf16 %v705_v37, %v701_v19  ;;  %v5342_v52 = vpack.c.bf16 %v818_v44, %v814_v14 }
 0x227   :  { %1150 = vrot.lane.b32.xlu0 %v5255_v16, %s4924_s3  ;;  %1244 = vrot.lane.b32.xlu1 %v5234_v51, %s4924_s3 }
 0x228   :  { %6373 = vst [vmem:[#allocation12_spill] sm:$0xff] %v5342_v52 }
 0x22a   :  { %v709_v55 = vpop.f32.mrb[52].mxu1  ;;  %v822_v0 = vpop.f32.mrb[68].mxu0 }
 0x22b   :  { %v824_v1 = vpop.f32.mrb[69].mxu0  ;;  %1246 = vrot.lane.b32.xlu1 %v5247_v4, %s4924_s3  ;;  %1332 = vrot.lane.b32.xlu0 %v5269_v36, %s4924_s3  ;;  %v711_v12 = vpop.f32.mrb[53].mxu1 }
 0x22c   :  { %v713_v13 = vpop.f32.mrb[54].mxu1  ;;  %v826_v19 = vpop.f32.mrb[70].mxu0 }
 0x22d   :  { %v5352_v14 = vpack.c.bf16 %v713_v13, %v709_v55  ;;  %v5354_v26 = vpack.c.bf16 %v826_v19, %v822_v0  ;;  %v715_v27 = vpop.f32.mrb[55].mxu1  ;;  %v828_v37 = vpop.f32.mrb[71].mxu0 }
 0x22e   :  { %v5356_v44 = vpack.c.bf16 %v715_v27, %v711_v12  ;;  %v5358_v28 = vpack.c.bf16 %v828_v37, %v824_v1 }
 0x22f   :  { %1248 = vrot.lane.b32.xlu1 %v5259_v24, %s4924_s3  ;;  %1334 = vrot.lane.b32.xlu0 %v5285_v56, %s4924_s3 }
 0x230   :  { %6374 = vst [vmem:[#allocation13_spill] sm:$0xff] %v5358_v28 }
 0x232   :  { %v719_v4 = vpop.f32.mrb[56].mxu1  ;;  %v832_v51 = vpop.f32.mrb[72].mxu0 }
 0x233   :  { %v834_v35 = vpop.f32.mrb[73].mxu0  ;;  %1430 = vrot.lane.b32.xlu1 %v5273_v40, %s4924_s3  ;;  %1336 = vrot.lane.b32.xlu0 %v5301_v20, %s4924_s3  ;;  %v721_v55 = vpop.f32.mrb[57].mxu1 }
 0x234   :  { %v723_v0 = vpop.f32.mrb[58].mxu1  ;;  %v836_v12 = vpop.f32.mrb[74].mxu0 }
 0x235   :  { %v5368_v1 = vpack.c.bf16 %v723_v0, %v719_v4  ;;  %v5370_v13 = vpack.c.bf16 %v836_v12, %v832_v51  ;;  %v725_v19 = vpop.f32.mrb[59].mxu1  ;;  %v838_v27 = vpop.f32.mrb[75].mxu0 }
 0x236   :  { %v5372_v37 = vpack.c.bf16 %v725_v19, %v721_v55  ;;  %v5374_v24 = vpack.c.bf16 %v838_v27, %v834_v35 }
 0x237   :  { %1432 = vrot.lane.b32.xlu1 %v5289_v2, %s4924_s3  ;;  %1338 = vrot.lane.b32.xlu0 %v5317_v53, %s4924_s3 }
 0x238   :  { %6375 = vst [vmem:[#allocation14_spill] sm:$0xff] %v5374_v24 }
 0x239   :  { %v941_v40 = vpop.permute.xlu0 %940 }
 0x23a   :  { %v729_v20 = vpop.f32.mrb[60].mxu1  ;;  %v842_v56 = vpop.f32.mrb[76].mxu0  ;;  %4407 = vmatprep.subr.bf16.mxu1 %v941_v40 }
 0x23b   :  { %v844_v4 = vpop.f32.mrb[77].mxu0  ;;  %4408 = vmatpush3.bf16.msra.mxu1 %v941_v40  ;;  %1434 = vrot.lane.b32.xlu1 %v5305_v29, %s4924_s3  ;;  %v731_v51 = vpop.f32.mrb[61].mxu1 }
 0x23c   :  { %1340 = vrot.lane.b32.xlu0 %v5336_v33, %s4924_s3  ;;  %v733_v35 = vpop.f32.mrb[62].mxu1  ;;  %v846_v55 = vpop.f32.mrb[78].mxu0 }
 0x23d   :  { %v5384_v0 = vpack.c.bf16 %v733_v35, %v729_v20  ;;  %v5386_v12 = vpack.c.bf16 %v846_v55, %v842_v56  ;;  %v735_v19 = vpop.f32.mrb[63].mxu1  ;;  %v848_v27 = vpop.f32.mrb[79].mxu0 }
 0x23e   :  { %v5388_v2 = vpack.c.bf16 %v735_v19, %v731_v51  ;;  %v5390_v53 = vpack.c.bf16 %v848_v27, %v844_v4 }
 0x23f   :  { %1436 = vrot.lane.b32.xlu1 %v5324_v8, %s4924_s3 }
 0x240   :  { %6376 = vst [vmem:[#allocation15_spill] sm:$0xff] %v5390_v53  ;;  %1342 = vrot.lane.b32.xlu0 %v5352_v14, %s4924_s3 }
 0x241   :  { %v943_v40 = vpop.permute.xlu0 %942 }
 0x242   :  { %4409 = vmatprep.subr.bf16.mxu1 %v943_v40 }
 0x243   :  { %4410 = vmatpush3.bf16.msra.mxu1 %v943_v40  ;;  %1438 = vrot.lane.b32.xlu1 %v5340_v47, %s4924_s3  ;;  %v4828_v40 = vld [vmem:[%s6327_s2 + $0x14] ss:$0 sps:$4 sm:$0x11]  }
 0x244   :  { %1344 = vrot.lane.b32.xlu0 %v5368_v1, %s4924_s3 }
 0x247   :  { %1440 = vrot.lane.b32.xlu1 %v5356_v44, %s4924_s3 }
 0x248   :  { %1346 = vrot.lane.b32.xlu0 %v5384_v0, %s4924_s3 }
 0x249   :  { %v945_v56 = vpop.permute.xlu1 %944 }
 0x24a   :  { %4411 = vmatprep.subr.bf16.mxu1 %v945_v56 }
 0x24b   :  { %4412 = vmatpush3.bf16.msra.mxu1 %v945_v56  ;;  %1442 = vrot.lane.b32.xlu1 %v5372_v37, %s4924_s3  ;;  %v4829_v56 = vld [vmem:[%s6327_s2 + $0x24] sm:$0xff]  }
 0x24c   :  { %1528 = vrot.lane.b32.xlu0 %v5271_v38, %s4924_s3 }
 0x24f   :  { %1444 = vrot.lane.b32.xlu1 %v5388_v2, %s4924_s3 }
 0x250   :  { %1530 = vrot.lane.b32.xlu0 %v5287_v59, %s4924_s3 }
 0x251   :  { %v947_v20 = vpop.permute.xlu1 %946 }
 0x252   :  { %4413 = vmatprep.subr.bf16.mxu1 %v947_v20 }
 0x253   :  { %4414 = vmatpush3.bf16.msra.mxu1 %v947_v20  ;;  %1626 = vrot.lane.b32.xlu1 %v5275_v41, %s4924_s3 }
 0x254   :  { %1532 = vrot.lane.b32.xlu0 %v5303_v25, %s4924_s3 }
 0x257   :  { %1628 = vrot.lane.b32.xlu1 %v5291_v7, %s4924_s3 }
 0x258   :  { %1534 = vrot.lane.b32.xlu0 %v5319_v54, %s4924_s3 }
 0x259   :  { %v949_v4 = vpop.permute.xlu0 %948 }
 0x25a   :  { %4415 = vmatprep.subr.bf16.mxu1 %v949_v4 }
 0x25b   :  { %4416 = vmatpush3.bf16.msra.mxu1 %v949_v4  ;;  %1630 = vrot.lane.b32.xlu1 %v5307_v32, %s4924_s3 }
 0x25c   :  { %1536 = vrot.lane.b32.xlu0 %v5338_v39, %s4924_s3 }
 0x25f   :  { %1632 = vrot.lane.b32.xlu1 %v5326_v11, %s4924_s3 }
 0x260   :  { %1538 = vrot.lane.b32.xlu0 %v5354_v26, %s4924_s3 }
 0x261   :  { %v951_v51 = vpop.permute.xlu1 %950 }
 0x262   :  { %4417 = vmatprep.subr.bf16.mxu1 %v951_v51 }
 0x263   :  { %4418 = vmatpush3.bf16.msra.mxu1 %v951_v51  ;;  %1634 = vrot.lane.b32.xlu1 %v5342_v52, %s4924_s3 }
 0x264   :  { %1540 = vrot.lane.b32.xlu0 %v5370_v13, %s4924_s3 }
 0x267   :  { %1636 = vrot.lane.b32.xlu1 %v5358_v28, %s4924_s3 }
 0x268   :  { %1542 = vrot.lane.b32.xlu0 %v5386_v12, %s4924_s3 }
 0x269   :  { %v953_v35 = vpop.permute.xlu0 %952 }
 0x26a   :  { %4419 = vmatprep.subr.bf16.mxu1 %v953_v35 }
 0x26b   :  { %4420 = vmatpush3.bf16.msra.mxu1 %v953_v35  ;;  %1638 = vrot.lane.b32.xlu1 %v5374_v24, %s4924_s3 }
 0x26d   :  { %v1039_v55 = vpop.permute.xlu0 %1038 }
 0x26f   :  { %1640 = vrot.lane.b32.xlu1 %v5390_v53, %s4924_s3 }
 0x271   :  { %v1043_v19 = vpop.permute.xlu0 %1042  ;;  %v955_v27 = vpop.permute.xlu1 %954 }
 0x272   :  { %4421 = vmatprep.subr.bf16.mxu1 %v955_v27 }
 0x273   :  { %4422 = vmatpush3.bf16.msra.mxu1 %v955_v27 }
 0x274   :  { %4427 = vmatprep.subr.bf16.mxu1 %v1039_v55 }
 0x275   :  { %v1047_v20 = vpop.permute.xlu0 %1046  ;;  %v1041_v4 = vpop.permute.xlu1 %1040 }
 0x276   :  { %4424 = vmatmul.mubr.bf16.vlgmr.msra.gmra.mrb[64].mxu1 %v4828_v40 }
 0x277   :  { %4428 = vmatpush3.bf16.msra.mxu1 %v1039_v55  ;;  %4443 = vmatprep.mubr.bf16.mxu1 %v4829_v56 }
 0x278   :  { %4429 = vmatprep.subr.bf16.mxu1 %v1041_v4 }
 0x279   :  { %v1051_v51 = vpop.permute.xlu0 %1050  ;;  %v1045_v35 = vpop.permute.xlu1 %1044 }
 0x27b   :  { %4430 = vmatpush3.bf16.msra.mxu1 %v1041_v4 }
 0x27c   :  { %4431 = vmatprep.subr.bf16.mxu1 %v1043_v19 }
 0x27d   :  { %v1137_v53 = vpop.permute.xlu0 %1136  ;;  %v1049_v24 = vpop.permute.xlu1 %1048 }
 0x27e   :  { %4447 = vmatprep.subr.bf16.mxu0 %v1137_v53 }
 0x27f   :  { %4432 = vmatpush3.bf16.msra.mxu1 %v1043_v19  ;;  %4448 = vmatpush3.bf16.msra.mxu0 %v1137_v53 }
 0x280   :  { %4433 = vmatprep.subr.bf16.mxu1 %v1045_v35 }
 0x281   :  { %v1139_v27 = vpop.permute.xlu0 %1138  ;;  %v1053_v28 = vpop.permute.xlu1 %1052 }
 0x282   :  { %4449 = vmatprep.subr.bf16.mxu0 %v1139_v27 }
 0x283   :  { %4434 = vmatpush3.bf16.msra.mxu1 %v1045_v35  ;;  %4450 = vmatpush3.bf16.msra.mxu0 %v1139_v27 }
 0x284   :  { %4435 = vmatprep.subr.bf16.mxu1 %v1047_v20 }
 0x285   :  { %v1141_v40 = vpop.permute.xlu0 %1140  ;;  %v1235_v55 = vpop.permute.xlu1 %1234 }
 0x286   :  { %4451 = vmatprep.subr.bf16.mxu0 %v1141_v40 }
 0x287   :  { %4436 = vmatpush3.bf16.msra.mxu1 %v1047_v20  ;;  %4452 = vmatpush3.bf16.msra.mxu0 %v1141_v40  ;;  %v4830_v20 = vld [vmem:[%s6327_s2 + $0x2c] ss:$0 sps:$4 sm:$0x11]  }
 0x288   :  { %4437 = vmatprep.subr.bf16.mxu1 %v1049_v24 }
 0x289   :  { %v1143_v56 = vpop.permute.xlu0 %1142  ;;  %v1237_v4 = vpop.permute.xlu1 %1236 }
 0x28a   :  { %4453 = vmatprep.subr.bf16.mxu0 %v1143_v56 }
 0x28b   :  { %4438 = vmatpush3.bf16.msra.mxu1 %v1049_v24  ;;  %4454 = vmatpush3.bf16.msra.mxu0 %v1143_v56  ;;  %v4833_v24 = vld [vmem:[%s6327_s2 + $0x54] sm:$0xff]  }
 0x28c   :  { %4439 = vmatprep.subr.bf16.mxu1 %v1051_v51 }
 0x28d   :  { %v1145_v53 = vpop.permute.xlu0 %1144  ;;  %v1239_v19 = vpop.permute.xlu1 %1238 }
 0x28e   :  { %4455 = vmatprep.subr.bf16.mxu0 %v1145_v53 }
 0x28f   :  { %4440 = vmatpush3.bf16.msra.mxu1 %v1051_v51  ;;  %4456 = vmatpush3.bf16.msra.mxu0 %v1145_v53 }
 0x290   :  { %4441 = vmatprep.subr.bf16.mxu1 %v1053_v28 }
 0x291   :  { %v1147_v35 = vpop.permute.xlu0 %1146  ;;  %v1241_v27 = vpop.permute.xlu1 %1240 }
 0x292   :  { %4457 = vmatprep.subr.bf16.mxu0 %v1147_v35 }
 0x293   :  { %4442 = vmatpush3.bf16.msra.mxu1 %v1053_v28  ;;  %4458 = vmatpush3.bf16.msra.mxu0 %v1147_v35  ;;  %v4832_v28 = vld [vmem:[%s6327_s2 + $0x44] ss:$0 sps:$4 sm:$0x11]   ;;  %v4835_v35 = vld [vmem:[%s6327_s2 + $0x6c] sm:$0xff]  }
 0x294   :  { %4467 = vmatprep.subr.bf16.mxu1 %v1235_v55 }
 0x295   :  { %v1149_v40 = vpop.permute.xlu0 %1148  ;;  %v1243_v56 = vpop.permute.xlu1 %1242 }
 0x296   :  { %4459 = vmatprep.subr.bf16.mxu0 %v1149_v40  ;;  %4444 = vmatmul.mubr.bf16.vlgmr.msra.gmra.mrb[68].mxu1 %v4830_v20 }
 0x297   :  { %4460 = vmatpush3.bf16.msra.mxu0 %v1149_v40  ;;  %4468 = vmatpush3.bf16.msra.mxu1 %v1235_v55 }
 0x298   :  { %4469 = vmatprep.subr.bf16.mxu1 %v1237_v4  ;;  %4483 = vmatprep.mubr.bf16.mxu1 %v4833_v24 }
 0x299   :  { %v1151_v51 = vpop.permute.xlu0 %1150  ;;  %v1245_v53 = vpop.permute.xlu1 %1244 }
 0x29a   :  { %4461 = vmatprep.subr.bf16.mxu0 %v1151_v51 }
 0x29b   :  { %4462 = vmatpush3.bf16.msra.mxu0 %v1151_v51  ;;  %4470 = vmatpush3.bf16.msra.mxu1 %v1237_v4 }
 0x29c   :  { %4471 = vmatprep.subr.bf16.mxu1 %v1239_v19 }
 0x29d   :  { %v1247_v52 = vpop.permute.xlu1 %1246  ;;  %v1333_v20 = vpop.permute.xlu0 %1332 }
 0x29e   :  { %4487 = vmatprep.subr.bf16.mxu0 %v1333_v20  ;;  %4464 = vmatmul.mubr.bf16.vlgmr.msra.gmra.mrb[80].mxu0 %v4832_v28 }
 0x29f   :  { %4472 = vmatpush3.bf16.msra.mxu1 %v1239_v19  ;;  %4488 = vmatpush3.bf16.msra.mxu0 %v1333_v20 }
 0x2a0   :  { %4473 = vmatprep.subr.bf16.mxu1 %v1241_v27  ;;  %4503 = vmatprep.mubr.bf16.mxu0 %v4835_v35 }
 0x2a1   :  { %v1249_v55 = vpop.permute.xlu1 %1248  ;;  %v1335_v24 = vpop.permute.xlu0 %1334 }
 0x2a2   :  { %4489 = vmatprep.subr.bf16.mxu0 %v1335_v24 }
 0x2a3   :  { %4474 = vmatpush3.bf16.msra.mxu1 %v1241_v27  ;;  %4490 = vmatpush3.bf16.msra.mxu0 %v1335_v24 }
 0x2a4   :  { %4475 = vmatprep.subr.bf16.mxu1 %v1243_v56 }
 0x2a5   :  { %v1431_v4 = vpop.permute.xlu1 %1430  ;;  %v1337_v40 = vpop.permute.xlu0 %1336 }
 0x2a6   :  { %4491 = vmatprep.subr.bf16.mxu0 %v1337_v40 }
 0x2a7   :  { %4476 = vmatpush3.bf16.msra.mxu1 %v1243_v56  ;;  %4492 = vmatpush3.bf16.msra.mxu0 %v1337_v40  ;;  %v4834_v56 = vld [vmem:[%s6327_s2 + $0x5c] ss:$0 sps:$4 sm:$0x11]  }
 0x2a8   :  { %4477 = vmatprep.subr.bf16.mxu1 %v1245_v53 }
 0x2a9   :  { %v1433_v51 = vpop.permute.xlu1 %1432  ;;  %v1339_v11 = vpop.permute.xlu0 %1338 }
 0x2aa   :  { %4493 = vmatprep.subr.bf16.mxu0 %v1339_v11 }
 0x2ab   :  { %4478 = vmatpush3.bf16.msra.mxu1 %v1245_v53  ;;  %4494 = vmatpush3.bf16.msra.mxu0 %v1339_v11  ;;  %v4837_v11 = vld [vmem:[%s6327_s2 + $0x84] sm:$0xff]  }
 0x2ac   :  { %4479 = vmatprep.subr.bf16.mxu1 %v1247_v52 }
 0x2ad   :  { %v1435_v19 = vpop.permute.xlu1 %1434 }
 0x2ae   :  { %v1341_v28 = vpop.permute.xlu0 %1340 }
 0x2af   :  { %4495 = vmatprep.subr.bf16.mxu0 %v1341_v28  ;;  %4480 = vmatpush3.bf16.msra.mxu1 %v1247_v52 }
 0x2b0   :  { %4496 = vmatpush3.bf16.msra.mxu0 %v1341_v28  ;;  %4481 = vmatprep.subr.bf16.mxu1 %v1249_v55  ;;  %v4839_v28 = vld [vmem:[%s6327_s2 + $0x9c] sm:$0xff]  }
 0x2b1   :  { %v1437_v27 = vpop.permute.xlu1 %1436 }
 0x2b2   :  { %v1343_v35 = vpop.permute.xlu0 %1342 }
 0x2b3   :  { %4497 = vmatprep.subr.bf16.mxu0 %v1343_v35  ;;  %4482 = vmatpush3.bf16.msra.mxu1 %v1249_v55  ;;  %v4836_v55 = vld [vmem:[%s6327_s2 + $0x74] ss:$0 sps:$4 sm:$0x11]  }
 0x2b4   :  { %4498 = vmatpush3.bf16.msra.mxu0 %v1343_v35  ;;  %4507 = vmatprep.subr.bf16.mxu1 %v1431_v4 }
 0x2b5   :  { %v1439_v20 = vpop.permute.xlu1 %1438 }
 0x2b6   :  { %v1345_v53 = vpop.permute.xlu0 %1344  ;;  %4484 = vmatmul.mubr.bf16.vlgmr.msra.gmra.mrb[72].mxu1 %v4834_v56 }
 0x2b7   :  { %4499 = vmatprep.subr.bf16.mxu0 %v1345_v53  ;;  %4508 = vmatpush3.bf16.msra.mxu1 %v1431_v4 }
 0x2b8   :  { %4500 = vmatpush3.bf16.msra.mxu0 %v1345_v53  ;;  %4509 = vmatprep.subr.bf16.mxu1 %v1433_v51 }
 0x2b9   :  { %v1441_v52 = vpop.permute.xlu1 %1440  ;;  %4523 = vmatprep.mubr.bf16.mxu1 %v4837_v11 }
 0x2ba   :  { %v1347_v24 = vpop.permute.xlu0 %1346 }
 0x2bb   :  { %4501 = vmatprep.subr.bf16.mxu0 %v1347_v24  ;;  %4510 = vmatpush3.bf16.msra.mxu1 %v1433_v51 }
 0x2bc   :  { %4502 = vmatpush3.bf16.msra.mxu0 %v1347_v24  ;;  %4511 = vmatprep.subr.bf16.mxu1 %v1435_v19 }
 0x2bd   :  { %v1443_v40 = vpop.permute.xlu1 %1442 }
 0x2be   :  { %v1529_v35 = vpop.permute.xlu0 %1528 }
 0x2bf   :  { %4527 = vmatprep.subr.bf16.mxu0 %v1529_v35  ;;  %4504 = vmatmul.mubr.bf16.vlgmr.msra.gmra.mrb[84].mxu0 %v4836_v55 }
 0x2c0   :  { %4512 = vmatpush3.bf16.msra.mxu1 %v1435_v19  ;;  %4528 = vmatpush3.bf16.msra.mxu0 %v1529_v35 }
 0x2c1   :  { %4513 = vmatprep.subr.bf16.mxu1 %v1437_v27  ;;  %v1445_v4 = vpop.permute.xlu1 %1444  ;;  %4543 = vmatprep.mubr.bf16.mxu0 %v4839_v28 }
 0x2c2   :  { %v1531_v51 = vpop.permute.xlu0 %1530 }
 0x2c3   :  { %4529 = vmatprep.subr.bf16.mxu0 %v1531_v51 }
 0x2c4   :  { %4514 = vmatpush3.bf16.msra.mxu1 %v1437_v27  ;;  %4530 = vmatpush3.bf16.msra.mxu0 %v1531_v51 }
 0x2c5   :  { %4515 = vmatprep.subr.bf16.mxu1 %v1439_v20  ;;  %v1627_v11 = vpop.permute.xlu1 %1626 }
 0x2c6   :  { %v1533_v56 = vpop.permute.xlu0 %1532 }
 0x2c7   :  { %4531 = vmatprep.subr.bf16.mxu0 %v1533_v56 }
 0x2c8   :  { %4516 = vmatpush3.bf16.msra.mxu1 %v1439_v20  ;;  %4532 = vmatpush3.bf16.msra.mxu0 %v1533_v56  ;;  %v4838_v20 = vld [vmem:[%s6327_s2 + $0x8c] ss:$0 sps:$4 sm:$0x11]   ;;  %v4843_v56 = vld [vmem:[%s6327_s2] sm:$0xff]  }
 0x2c9   :  { %4517 = vmatprep.subr.bf16.mxu1 %v1441_v52  ;;  %v1629_v24 = vpop.permute.xlu1 %1628 }
 0x2ca   :  { %v1535_v53 = vpop.permute.xlu0 %1534 }
 0x2cb   :  { %4533 = vmatprep.subr.bf16.mxu0 %v1535_v53 }
 0x2cc   :  { %4518 = vmatpush3.bf16.msra.mxu1 %v1441_v52  ;;  %4534 = vmatpush3.bf16.msra.mxu0 %v1535_v53  ;;  %v4841_v52 = vld [vmem:[%s6327_s2 + $0xb4] sm:$0xff]  }
 0x2cd   :  { %4519 = vmatprep.subr.bf16.mxu1 %v1443_v40  ;;  %v1631_v27 = vpop.permute.xlu1 %1630 }
 0x2ce   :  { %v1537_v19 = vpop.permute.xlu0 %1536 }
 0x2cf   :  { %4535 = vmatprep.subr.bf16.mxu0 %v1537_v19 }
 0x2d0   :  { %4520 = vmatpush3.bf16.msra.mxu1 %v1443_v40  ;;  %4536 = vmatpush3.bf16.msra.mxu0 %v1537_v19 }
 0x2d1   :  { %4521 = vmatprep.subr.bf16.mxu1 %v1445_v4  ;;  %v1633_v40 = vpop.permute.xlu1 %1632 }
 0x2d2   :  { %v1539_v55 = vpop.permute.xlu0 %1538 }
 0x2d3   :  { %4537 = vmatprep.subr.bf16.mxu0 %v1539_v55 }
 0x2d4   :  { %4522 = vmatpush3.bf16.msra.mxu1 %v1445_v4  ;;  %4538 = vmatpush3.bf16.msra.mxu0 %v1539_v55  ;;  %v4840_v4 = vld [vmem:[%s6327_s2 + $0xa4] ss:$0 sps:$4 sm:$0x11]  }
 0x2d5   :  { %4547 = vmatprep.subr.bf16.mxu1 %v1627_v11  ;;  %v1635_v51 = vpop.permute.xlu1 %1634 }
 0x2d6   :  { %v1541_v28 = vpop.permute.xlu0 %1540 }
 0x2d7   :  { %4539 = vmatprep.subr.bf16.mxu0 %v1541_v28  ;;  %4524 = vmatmul.mubr.bf16.vlgmr.msra.gmra.mrb[76].mxu1 %v4838_v20 }
 0x2d8   :  { %4540 = vmatpush3.bf16.msra.mxu0 %v1541_v28  ;;  %4548 = vmatpush3.bf16.msra.mxu1 %v1627_v11 }
 0x2d9   :  { %4549 = vmatprep.subr.bf16.mxu1 %v1629_v24  ;;  %4563 = vmatprep.mubr.bf16.mxu1 %v4841_v52  ;;  %v1637_v11 = vpop.permute.xlu1 %1636 }
 0x2da   :  { %v1543_v35 = vpop.permute.xlu0 %1542 }
 0x2db   :  { %4541 = vmatprep.subr.bf16.mxu0 %v1543_v35 }
 0x2dc   :  { %4542 = vmatpush3.bf16.msra.mxu0 %v1543_v35  ;;  %4550 = vmatpush3.bf16.msra.mxu1 %v1629_v24 }
 0x2dd   :  { %4551 = vmatprep.subr.bf16.mxu1 %v1631_v27  ;;  %4567 = vmatprep.subr.bf16.mxu0 %v5178_v45  ;;  %v1639_v53 = vpop.permute.xlu1 %1638 }
 0x2df   :  { %4544 = vmatmul.mubr.bf16.vlgmr.msra.gmra.mrb[88].mxu0 %v4840_v4 }
 0x2e0   :  { %4552 = vmatpush3.bf16.msra.mxu1 %v1631_v27  ;;  %4568 = vmatpush3.bf16.msra.mxu0 %v5178_v45 }
 0x2e1   :  { %4553 = vmatprep.subr.bf16.mxu1 %v1633_v40  ;;  %4569 = vmatprep.subr.bf16.mxu0 %v5188_v57  ;;  %v1641_v45 = vpop.permute.xlu1 %1640 }
 0x2e2   :  { %4583 = vmatprep.mubr.bf16.mxu0 %v4843_v56  ;;  %v4861_v56 = vld [vmem:[%s6328_s5 + $0x4] ss:$20 sps:$4 sm:$0xff]  }
 0x2e4   :  { %4554 = vmatpush3.bf16.msra.mxu1 %v1633_v40  ;;  %4570 = vmatpush3.bf16.msra.mxu0 %v5188_v57  ;;  %v4842_v57 = vld [vmem:[%s6327_s2 + $0xbc] ss:$0 sps:$4 sm:$0x11]  }
 0x2e5   :  { %4555 = vmatprep.subr.bf16.mxu1 %v1635_v51  ;;  %4571 = vmatprep.subr.bf16.mxu0 %v5198_v5 }
 0x2e8   :  { %4556 = vmatpush3.bf16.msra.mxu1 %v1635_v51  ;;  %4572 = vmatpush3.bf16.msra.mxu0 %v5198_v5  ;;  %v4845_v5 = vld [vmem:[%s6327_s2 + $0x18] sm:$0xff]  }
 0x2e9   :  { %4557 = vmatprep.subr.bf16.mxu1 %v1637_v11  ;;  %4573 = vmatprep.subr.bf16.mxu0 %v5208_v17 }
 0x2ec   :  { %4558 = vmatpush3.bf16.msra.mxu1 %v1637_v11  ;;  %4574 = vmatpush3.bf16.msra.mxu0 %v5208_v17  ;;  %v4844_v17 = vld [vmem:[%s6327_s2 + $0x8] ss:$0 sps:$4 sm:$0x11]  }
 0x2ed   :  { %4559 = vmatprep.subr.bf16.mxu1 %v1639_v53  ;;  %4575 = vmatprep.subr.bf16.mxu0 %v5218_v30 }
 0x2f0   :  { %4560 = vmatpush3.bf16.msra.mxu1 %v1639_v53  ;;  %4576 = vmatpush3.bf16.msra.mxu0 %v5218_v30  ;;  %v4850_v30 = vld [vmem:[%s6327_s2 + $0x50] ss:$0 sps:$4 sm:$0x11]   ;;  %v4859_v53 = vld [vmem:[%s6328_s5] ss:$20 sps:$4 sm:$0xff]  }
 0x2f1   :  { %4561 = vmatprep.subr.bf16.mxu1 %v1641_v45  ;;  %4577 = vmatprep.subr.bf16.mxu0 %v5228_v42 }
 0x2f4   :  { %4562 = vmatpush3.bf16.msra.mxu1 %v1641_v45  ;;  %4578 = vmatpush3.bf16.msra.mxu0 %v5228_v42  ;;  %v6385_v42 = vld [vmem:[#allocation8_spill] sm:$0xff] }
 0x2f5   :  { %4579 = vmatprep.subr.bf16.mxu0 %v5238_v60  ;;  %4587 = vmatprep.subr.bf16.mxu1 %v5182_v49 }
 0x2f7   :  { %4564 = vmatmul.mubr.bf16.vlgmr.msra.gmra.mrb[80].mxu1 %v4842_v57  ;;  %v4862_v57 = vld [vmem:[%s6328_s5 + $0x10] ss:$20 sps:$4 sm:$0xff]  }
 0x2f8   :  { %4580 = vmatpush3.bf16.msra.mxu0 %v5238_v60  ;;  %4588 = vmatpush3.bf16.msra.mxu1 %v5182_v49  ;;  %v4847_v49 = vld [vmem:[%s6327_s2 + $0x30] sm:$0xff]  }
 0x2f9   :  { %4581 = vmatprep.subr.bf16.mxu0 %v5253_v15  ;;  %4589 = vmatprep.subr.bf16.mxu1 %v5192_v61 }
 0x2fa   :  { %4603 = vmatprep.mubr.bf16.mxu1 %v4845_v5 }
 0x2fc   :  { %4582 = vmatpush3.bf16.msra.mxu0 %v5253_v15  ;;  %4590 = vmatpush3.bf16.msra.mxu1 %v5192_v61  ;;  %v4848_v61 = vld [vmem:[%s6327_s2 + $0x38] ss:$0 sps:$4 sm:$0x11]  }
 0x2fd   :  { %4591 = vmatprep.subr.bf16.mxu1 %v5202_v9  ;;  %4607 = vmatprep.subr.bf16.mxu0 %v5180_v46 }
 0x2ff   :  { %4584 = vmatmul.mubr.bf16.vlgmr.msra.gmra.mrb[92].mxu0 %v4844_v17  ;;  %v4865_v17 = vld [vmem:[%s6328_s5 + $0x2c] ss:$20 sps:$4 sm:$0xff]  }
 0x300   :  { %4592 = vmatpush3.bf16.msra.mxu1 %v5202_v9  ;;  %4608 = vmatpush3.bf16.msra.mxu0 %v5180_v46  ;;  %v4846_v46 = vld [vmem:[%s6327_s2 + $0x20] ss:$0 sps:$4 sm:$0x11]   ;;  %v6379_v9 = vld [vmem:[#allocation9_spill] sm:$0xff] }
 0x301   :  { %4593 = vmatprep.subr.bf16.mxu1 %v5212_v21  ;;  %4609 = vmatprep.subr.bf16.mxu0 %v5190_v58 }
 0x302   :  { %4623 = vmatprep.mubr.bf16.mxu0 %v4847_v49  ;;  %v4863_v49 = vld [vmem:[%s6328_s5 + $0x28] ss:$20 sps:$4 sm:$0xff]  }
 0x304   :  { %4594 = vmatpush3.bf16.msra.mxu1 %v5212_v21  ;;  %4610 = vmatpush3.bf16.msra.mxu0 %v5190_v58  ;;  %v4849_v58 = vld [vmem:[%s6327_s2 + $0x48] sm:$0xff]   ;;  %v6382_v21 = vld [vmem:[#allocation4_spill] sm:$0xff] }
 0x305   :  { %4595 = vmatprep.subr.bf16.mxu1 %v5222_v34  ;;  %4611 = vmatprep.subr.bf16.mxu0 %v5200_v6 }
 0x308   :  { %4596 = vmatpush3.bf16.msra.mxu1 %v5222_v34  ;;  %4612 = vmatpush3.bf16.msra.mxu0 %v5200_v6  ;;  %v6377_v6 = vld [vmem:[#allocation7_spill] sm:$0xff]  ;;  %v4853_v34 = vld [vmem:[%s6327_s2 + $0x78] sm:$0xff]  }
 0x309   :  { %4597 = vmatprep.subr.bf16.mxu1 %v5232_v48  ;;  %4613 = vmatprep.subr.bf16.mxu0 %v5210_v18 }
 0x30c   :  { %4598 = vmatpush3.bf16.msra.mxu1 %v5232_v48  ;;  %4614 = vmatpush3.bf16.msra.mxu0 %v5210_v18  ;;  %v6381_v18 = vld [vmem:[#allocation10_spill] sm:$0xff]  ;;  %v4855_v48 = vld [vmem:[%s6327_s2 + $0x90] sm:$0xff]  }
 0x30d   :  { %4599 = vmatprep.subr.bf16.mxu1 %v5245_v3  ;;  %4615 = vmatprep.subr.bf16.mxu0 %v5220_v31 }
 0x310   :  { %4600 = vmatpush3.bf16.msra.mxu1 %v5245_v3  ;;  %4616 = vmatpush3.bf16.msra.mxu0 %v5220_v31  ;;  %v6384_v31 = vld [vmem:[#allocation6_spill] sm:$0xff] }
 0x311   :  { %4601 = vmatprep.subr.bf16.mxu1 %v5257_v23  ;;  %4617 = vmatprep.subr.bf16.mxu0 %v5230_v43 }
 0x314   :  { %4602 = vmatpush3.bf16.msra.mxu1 %v5257_v23  ;;  %4618 = vmatpush3.bf16.msra.mxu0 %v5230_v43  ;;  %v4852_v43 = vld [vmem:[%s6327_s2 + $0x68] ss:$0 sps:$4 sm:$0x11]  }
 0x315   :  { %4619 = vmatprep.subr.bf16.mxu0 %v5240_v63  ;;  %4627 = vmatprep.subr.bf16.mxu1 %v5184_v50  ;;  %v4857_v23 = vld [vmem:[%s6327_s2 + $0xa8] sm:$0xff]  }
 0x317   :  { %4604 = vmatmul.mubr.bf16.vlgmr.msra.gmra.mrb[84].mxu1 %v4846_v46  ;;  %v4866_v46 = vld [vmem:[%s6328_s5 + $0x38] ss:$20 sps:$4 sm:$0xff]  }
 0x318   :  { %4620 = vmatpush3.bf16.msra.mxu0 %v5240_v63  ;;  %4628 = vmatpush3.bf16.msra.mxu1 %v5184_v50  ;;  %v4851_v50 = vld [vmem:[%s6327_s2 + $0x60] sm:$0xff]  }
 0x319   :  { %4621 = vmatprep.subr.bf16.mxu0 %v5255_v16  ;;  %4629 = vmatprep.subr.bf16.mxu1 %v5194_v62 }
 0x31a   :  { %4643 = vmatprep.mubr.bf16.mxu1 %v4849_v58 }
 0x31c   :  { %4622 = vmatpush3.bf16.msra.mxu0 %v5255_v16  ;;  %4630 = vmatpush3.bf16.msra.mxu1 %v5194_v62  ;;  %v6378_v62 = vld [vmem:[#allocation2_spill] sm:$0xff] }
 0x31d   :  { %4631 = vmatprep.subr.bf16.mxu1 %v5204_v10  ;;  %4647 = vmatprep.subr.bf16.mxu0 %v5269_v36  ;;  %v4854_v16 = vld [vmem:[%s6327_s2 + $0x80] ss:$0 sps:$4 sm:$0x11]  }
 0x31f   :  { %4624 = vmatmul.mubr.bf16.vlgmr.msra.gmra.mrb[96].mxu0 %v4848_v61  ;;  %v4869_v61 = vld [vmem:[%s6328_s5 + $0x54] ss:$20 sps:$4 sm:$0xff]  }
 0x320   :  { %4632 = vmatpush3.bf16.msra.mxu1 %v5204_v10  ;;  %4648 = vmatpush3.bf16.msra.mxu0 %v5269_v36  ;;  %v6380_v10 = vld [vmem:[#allocation3_spill] sm:$0xff]  ;;  %v4856_v36 = vld [vmem:[%s6327_s2 + $0x98] ss:$0 sps:$4 sm:$0x11]  }
 0x321   :  { %4633 = vmatprep.subr.bf16.mxu1 %v5214_v22  ;;  %4649 = vmatprep.subr.bf16.mxu0 %v6377_v6 }
 0x322   :  { %4663 = vmatprep.mubr.bf16.mxu0 %v4851_v50 }
 0x324   :  { %4634 = vmatpush3.bf16.msra.mxu1 %v5214_v22  ;;  %4650 = vmatpush3.bf16.msra.mxu0 %v6377_v6  ;;  %v6383_v22 = vld [vmem:[#allocation5_spill] sm:$0xff] }
 0x325   :  { %4635 = vmatprep.subr.bf16.mxu1 %v6378_v62  ;;  %4651 = vmatprep.subr.bf16.mxu0 %v6379_v9 }
 0x328   :  { %4636 = vmatpush3.bf16.msra.mxu1 %v6378_v62  ;;  %4652 = vmatpush3.bf16.msra.mxu0 %v6379_v9  ;;  %v4867_v62 = vld [vmem:[%s6328_s5 + $0x50] ss:$20 sps:$4 sm:$0xff]   ;;  %v4870_v9 = vld [vmem:[%s6328_s5 + $0x60] ss:$20 sps:$4 sm:$0xff]  }
 0x329   :  { %4637 = vmatprep.subr.bf16.mxu1 %v6380_v10  ;;  %4653 = vmatprep.subr.bf16.mxu0 %v6381_v18 }
 0x32c   :  { %4638 = vmatpush3.bf16.msra.mxu1 %v6380_v10  ;;  %4654 = vmatpush3.bf16.msra.mxu0 %v6381_v18 }
 0x32d   :  { %4639 = vmatprep.subr.bf16.mxu1 %v6382_v21  ;;  %4655 = vmatprep.subr.bf16.mxu0 %v5336_v33 }
 0x330   :  { %4640 = vmatpush3.bf16.msra.mxu1 %v6382_v21  ;;  %4656 = vmatpush3.bf16.msra.mxu0 %v5336_v33 }
 0x331   :  { %4641 = vmatprep.subr.bf16.mxu1 %v6383_v22  ;;  %4657 = vmatprep.subr.bf16.mxu0 %v5352_v14 }
 0x334   :  { %4642 = vmatpush3.bf16.msra.mxu1 %v6383_v22  ;;  %4658 = vmatpush3.bf16.msra.mxu0 %v5352_v14 }
 0x335   :  { %4659 = vmatprep.subr.bf16.mxu0 %v5368_v1  ;;  %4667 = vmatprep.subr.bf16.mxu1 %v6384_v31 }
 0x337   :  { %4644 = vmatmul.mubr.bf16.vlgmr.msra.gmra.mrb[88].mxu1 %v4850_v30  ;;  %v4873_v30 = vld [vmem:[%s6328_s5 + $0x7c] ss:$20 sps:$4 sm:$0xff]  }
 0x338   :  { %4660 = vmatpush3.bf16.msra.mxu0 %v5368_v1  ;;  %4668 = vmatpush3.bf16.msra.mxu1 %v6384_v31  ;;  %v4871_v31 = vld [vmem:[%s6328_s5 + $0x78] ss:$20 sps:$4 sm:$0xff]  }
 0x339   :  { %4661 = vmatprep.subr.bf16.mxu0 %v5384_v0  ;;  %4669 = vmatprep.subr.bf16.mxu1 %v6385_v42 }
 0x33a   :  { %4683 = vmatprep.mubr.bf16.mxu1 %v4853_v34  ;;  %v4874_v34 = vld [vmem:[%s6328_s5 + $0x88] ss:$20 sps:$4 sm:$0xff]  }
 0x33c   :  { %4662 = vmatpush3.bf16.msra.mxu0 %v5384_v0  ;;  %4670 = vmatpush3.bf16.msra.mxu1 %v6385_v42  ;;  %v4877_v42 = vld [vmem:[%s6328_s5 + $0xc] ss:$20 sps:$4 sm:$0xff]  }
 0x33d   :  { %4671 = vmatprep.subr.bf16.mxu1 %v5305_v29  ;;  %4687 = vmatprep.subr.bf16.mxu0 %v5271_v38 }
 0x33f   :  { %4664 = vmatmul.mubr.bf16.vlgmr.msra.gmra.mrb[100].mxu0 %v4852_v43 }
 0x340   :  { %4672 = vmatpush3.bf16.msra.mxu1 %v5305_v29  ;;  %4688 = vmatpush3.bf16.msra.mxu0 %v5271_v38  ;;  %v6386_v38 = vmov 0  }
 0x341   :  { %4673 = vmatprep.subr.bf16.mxu1 %v5324_v8  ;;  %4689 = vmatprep.subr.bf16.mxu0 %v5287_v59 }
 0x342   :  { %4703 = vmatprep.mubr.bf16.mxu0 %v4855_v48 }
 0x344   :  { %4674 = vmatpush3.bf16.msra.mxu1 %v5324_v8  ;;  %4690 = vmatpush3.bf16.msra.mxu0 %v5287_v59  ;;  %v6388_v59 = vld [vmem:[#allocation12_spill] sm:$0xff]  ;;  %v6391_v8 = vld [vmem:[#allocation15_spill] sm:$0xff] }
 0x345   :  { %4675 = vmatprep.subr.bf16.mxu1 %v5340_v47  ;;  %4691 = vmatprep.subr.bf16.mxu0 %v5303_v25 }
 0x348   :  { %4676 = vmatpush3.bf16.msra.mxu1 %v5340_v47  ;;  %4692 = vmatpush3.bf16.msra.mxu0 %v5303_v25  ;;  %v4858_v47 = vld [vmem:[%s6327_s2 + $0xb0] ss:$0 sps:$4 sm:$0x11]  }
 0x349   :  { %4677 = vmatprep.subr.bf16.mxu1 %v5356_v44  ;;  %4693 = vmatprep.subr.bf16.mxu0 %v5319_v54  ;;  %v5616_v60 = vpop.f32.mrb[64].mxu1 }
 0x34a   :  { %v5618_v63 = vpop.f32.mrb[65].mxu1 }
 0x34b   :  { %v4426_v3 = vpop.f32.mrb[66].mxu1 }
 0x34c   :  { %4678 = vmatpush3.bf16.msra.mxu1 %v5356_v44  ;;  %4694 = vmatpush3.bf16.msra.mxu0 %v5319_v54  ;;  %v5622_v15 = vpop.f32.mrb[67].mxu1  ;;  %v6390_v54 = vld [vmem:[#allocation14_spill] sm:$0xff] }
 0x34d   :  { %4679 = vmatprep.subr.bf16.mxu1 %v5372_v37  ;;  %4695 = vmatprep.subr.bf16.mxu0 %v5338_v39 }
 0x350   :  { %4680 = vmatpush3.bf16.msra.mxu1 %v5372_v37  ;;  %4696 = vmatpush3.bf16.msra.mxu0 %v5338_v39 }
 0x351   :  { %4681 = vmatprep.subr.bf16.mxu1 %v5388_v2  ;;  %4697 = vmatprep.subr.bf16.mxu0 %v5354_v26 }
 0x354   :  { %4682 = vmatpush3.bf16.msra.mxu1 %v5388_v2  ;;  %4698 = vmatpush3.bf16.msra.mxu0 %v5354_v26  ;;  %v6389_v2 = vld [vmem:[#allocation13_spill] sm:$0xff] }
 0x355   :  { %4699 = vmatprep.subr.bf16.mxu0 %v5370_v13  ;;  %4707 = vmatprep.subr.bf16.mxu1 %v5275_v41 }
 0x357   :  { %4684 = vmatmul.mubr.bf16.vlgmr.msra.gmra.mrb[92].mxu1 %v4854_v16 }
 0x358   :  { %4700 = vmatpush3.bf16.msra.mxu0 %v5370_v13  ;;  %4708 = vmatpush3.bf16.msra.mxu1 %v5275_v41  ;;  %v6387_v41 = vld [vmem:[#allocation11_spill] sm:$0xff] }
 0x359   :  { %4701 = vmatprep.subr.bf16.mxu0 %v5386_v12  ;;  %4709 = vmatprep.subr.bf16.mxu1 %v5291_v7 }
 0x35a   :  { %4723 = vmatprep.mubr.bf16.mxu1 %v4857_v23 }
 0x35c   :  { %4702 = vmatpush3.bf16.msra.mxu0 %v5386_v12  ;;  %4710 = vmatpush3.bf16.msra.mxu1 %v5291_v7 }
 0x35d   :  { %4711 = vmatprep.subr.bf16.mxu1 %v5307_v32  ;;  %2331 = vmatprep.subr.bf16.mxu0 %v4861_v56 }
 0x35f   :  { %4704 = vmatmul.mubr.bf16.vlgmr.msra.gmra.mrb[104].mxu0 %v4856_v36 }
 0x360   :  { %4712 = vmatpush3.bf16.msra.mxu1 %v5307_v32  ;;  %2363 = vmatprep.mubr.bf16.mxu0 %v6386_v38 }
 0x361   :  { %4713 = vmatprep.subr.bf16.mxu1 %v6387_v41  ;;  %2332 = vmatpush1.bf16.msra.mxu0 %v4859_v53 }
 0x362   :  { %2333 = vmatprep.subr.bf16.mxu0 %v4865_v17 }
 0x364   :  { %4714 = vmatpush3.bf16.msra.mxu1 %v6387_v41 }
 0x365   :  { %4715 = vmatprep.subr.bf16.mxu1 %v6388_v59  ;;  %2334 = vmatpush1.bf16.msra.mxu0 %v4863_v49 }
 0x366   :  { %2335 = vmatprep.subr.bf16.mxu0 %v4869_v61 }
 0x368   :  { %4716 = vmatpush3.bf16.msra.mxu1 %v6388_v59 }
 0x369   :  { %4717 = vmatprep.subr.bf16.mxu1 %v6389_v2  ;;  %v5657_v25 = vpop.f32.mrb[68].mxu1  ;;  %2336 = vmatpush1.bf16.msra.mxu0 %v4867_v62 }
 0x36a   :  { %v5659_v7 = vpop.f32.mrb[69].mxu1  ;;  %2337 = vmatprep.subr.bf16.mxu0 %v4873_v30 }
 0x36b   :  { %v4446_v29 = vpop.f32.mrb[70].mxu1 }
 0x36c   :  { %4718 = vmatpush3.bf16.msra.mxu1 %v6389_v2  ;;  %v5662_v32 = vpop.f32.mrb[71].mxu1 }
 0x36d   :  { %4719 = vmatprep.subr.bf16.mxu1 %v6390_v54  ;;  %2338 = vmatpush1.bf16.msra.mxu0 %v4871_v31 }
 0x36e   :  { %2382 = vmatprep.subr.bf16.mxu0 %v4877_v42 }
 0x370   :  { %4720 = vmatpush3.bf16.msra.mxu1 %v6390_v54 }
 0x371   :  { %4721 = vmatprep.subr.bf16.mxu1 %v6391_v8  ;;  %v5667_v33 = vpop.f32.mrb[80].mxu0 }
 0x372   :  { %v5669_v39 = vpop.f32.mrb[81].mxu0 }
 0x373   :  { %v4466_v14 = vpop.f32.mrb[82].mxu0 }
 0x374   :  { %4722 = vmatpush3.bf16.msra.mxu1 %v6391_v8  ;;  %v5675_v26 = vpop.f32.mrb[83].mxu0 }
 0x375   :  { %4727 = vmatprep.subr.bf16.mxu1 %v4862_v57 }
 0x377   :  { %4724 = vmatmul.mubr.bf16.vlgmr.msra.gmra.mrb[96].mxu1 %v4858_v47 }
 0x378   :  { %4728 = vmatpush3.bf16.msra.mxu1 %v4862_v57 }
 0x379   :  { %4729 = vmatprep.subr.bf16.mxu1 %v4866_v46 }
 0x37c   :  { %4730 = vmatpush3.bf16.msra.mxu1 %v4866_v46 }
 0x37d   :  { %4731 = vmatprep.subr.bf16.mxu1 %v4870_v9 }
 0x380   :  { %4732 = vmatpush3.bf16.msra.mxu1 %v4870_v9 }
 0x381   :  { %4733 = vmatprep.subr.bf16.mxu1 %v4874_v34 }
 0x384   :  { %4734 = vmatpush3.bf16.msra.mxu1 %v4874_v34 }
 0x389   :  { %v5677_v44 = vpop.f32.mrb[72].mxu1 }
 0x38a   :  { %v5679_v1 = vpop.f32.mrb[73].mxu1 }
 0x38b   :  { %v4486_v13 = vpop.f32.mrb[74].mxu1 }
 0x38c   :  { %v5681_v37 = vpop.f32.mrb[75].mxu1 }
 0x392   :  { %v5683_v0 = vpop.f32.mrb[84].mxu0 }
 0x393   :  { %v5685_v12 = vpop.f32.mrb[85].mxu0 }
 0x394   :  { %v4506_v24 = vpop.f32.mrb[86].mxu0 }
 0x395   :  { %v5687_v19 = vpop.f32.mrb[87].mxu0 }
 0x3aa   :  { %v5689_v27 = vpop.f32.mrb[76].mxu1 }
 0x3ab   :  { %v5691_v55 = vpop.f32.mrb[77].mxu1 }
 0x3ac   :  { %v4526_v20 = vpop.f32.mrb[78].mxu1 }
 0x3ad   :  { %v5693_v52 = vpop.f32.mrb[79].mxu1 }
 0x3b2   :  { %v5695_v28 = vpop.f32.mrb[88].mxu0 }
 0x3b3   :  { %v5697_v40 = vpop.f32.mrb[89].mxu0 }
 0x3b4   :  { %v4546_v35 = vpop.f32.mrb[90].mxu0 }
 0x3b5   :  { %v5699_v4 = vpop.f32.mrb[91].mxu0 }
 0x3ca   :  { %v5701_v51 = vpop.f32.mrb[80].mxu1 }
 0x3cb   :  { %v5706_v11 = vpop.f32.mrb[81].mxu1 }
 0x3cc   :  { %v4566_v45 = vpop.f32.mrb[82].mxu1 }
 0x3cd   :  { %v5714_v5 = vpop.f32.mrb[83].mxu1 }
 0x3d2   :  { %v4585_v58 = vpop.f32.mrb[92].mxu0 }
 0x3d3   :  { %v1751_v50 = vadd.f32 %v4585_v58, %v5616_v60  ;;  %v1742_v6 = vpop.f32.mrb[93].mxu0 }
 0x3d4   :  { %v1743_v10 = vadd.f32 %v1742_v6, %v5618_v63  ;;  %v4586_v18 = vpop.f32.mrb[94].mxu0 }
 0x3d5   :  { %v1745_v21 = vpop.f32.mrb[95].mxu0 }
 0x3d6   :  { %v1746_v22 = vadd.f32 %v1745_v21, %v5622_v15 }
 0x3ea   :  { %v4605_v43 = vpop.f32.mrb[84].mxu1 }
 0x3eb   :  { %v1809_v48 = vadd.f32 %v4605_v43, %v5657_v25  ;;  %v1800_v60 = vpop.f32.mrb[85].mxu1 }
 0x3ec   :  { %v1801_v63 = vadd.f32 %v1800_v60, %v5659_v7  ;;  %v4606_v3 = vpop.f32.mrb[86].mxu1 }
 0x3ed   :  { %v2164_v15 = vadd.f32 %v1809_v48, %v1751_v50  ;;  %v1803_v16 = vpop.f32.mrb[87].mxu1 }
 0x3ee   :  { %v2162_v23 = vadd.f32 %v1801_v63, %v1743_v10  ;;  %v1804_v36 = vadd.f32 %v1803_v16, %v5662_v32 }
 0x3f0   :  { %v2163_v41 = vadd.f32 %v1804_v36, %v1746_v22 }
 0x3f2   :  { %v4625_v59 = vpop.f32.mrb[96].mxu0 }
 0x3f3   :  { %v1867_v2 = vadd.f32 %v4625_v59, %v5667_v33  ;;  %v1858_v29 = vpop.f32.mrb[97].mxu0 }
 0x3f4   :  { %v1859_v54 = vadd.f32 %v1858_v29, %v5669_v39  ;;  %v4626_v8 = vpop.f32.mrb[98].mxu0 }
 0x3f5   :  { %v1861_v47 = vpop.f32.mrb[99].mxu0 }
 0x3f6   :  { %v1862_v25 = vadd.f32 %v1861_v47, %v5675_v26 }
 0x40a   :  { %v4645_v14 = vpop.f32.mrb[88].mxu1 }
 0x40b   :  { %v1925_v7 = vadd.f32 %v4645_v14, %v5677_v44  ;;  %v1916_v13 = vpop.f32.mrb[89].mxu1 }
 0x40c   :  { %v1917_v24 = vadd.f32 %v1916_v13, %v5679_v1  ;;  %v4646_v20 = vpop.f32.mrb[90].mxu1  ;;  %v4883_v13 = vld [vmem:[%s6328_s5 + $0x5c] ss:$20 sps:$4 sm:$0xff]  }
 0x40d   :  { %v2167_v35 = vadd.f32 %v1925_v7, %v1867_v2  ;;  %v1919_v32 = vpop.f32.mrb[91].mxu1  ;;  %v4878_v7 = vld [vmem:[%s6328_s5 + $0x30] ss:$20 sps:$4 sm:$0xff]  }
 0x40e   :  { %v2165_v56 = vadd.f32 %v1917_v24, %v1859_v54  ;;  %v1920_v53 = vadd.f32 %v1919_v32, %v5681_v37  ;;  %v4881_v24 = vld [vmem:[%s6328_s5 + $0x58] ss:$20 sps:$4 sm:$0xff]   ;;  %v4925_v32 = vmov 0.0  }
 0x40f   :  { %v2176_v33 = vadd.f32 %v2167_v35, %v2164_v15  ;;  %v4886_v20 = vld [vmem:[%s6328_s5 + $0x84] ss:$20 sps:$4 sm:$0xff]   ;;  %v4884_v35 = vld [vmem:[%s6328_s5 + $0x80] ss:$20 sps:$4 sm:$0xff]   ;;  %4747 = vmatprep.subr.bf16.mxu1 %v4925_v32 }
 0x410   :  { %v2174_v45 = vadd.f32 %v2165_v56, %v2162_v23  ;;  %v2166_v57 = vadd.f32 %v1920_v53, %v1862_v25  ;;  %v4880_v25 = vld [vmem:[%s6328_s5 + $0x34] ss:$20 sps:$4 sm:$0xff]  }
 0x412   :  { %v2175_v39 = vadd.f32 %v2166_v57, %v2163_v41  ;;  %v4665_v17 = vpop.f32.mrb[100].mxu0 }
 0x413   :  { %v1983_v49 = vadd.f32 %v4665_v17, %v5683_v0  ;;  %v1974_v26 = vpop.f32.mrb[101].mxu0 }
 0x414   :  { %v1975_v46 = vadd.f32 %v1974_v26, %v5685_v12  ;;  %v4666_v44 = vpop.f32.mrb[102].mxu0 }
 0x415   :  { %v1977_v58 = vpop.f32.mrb[103].mxu0 }
 0x416   :  { %v1978_v1 = vadd.f32 %v1977_v58, %v5687_v19 }
 0x42a   :  { %v4685_v61 = vpop.f32.mrb[92].mxu1 }
 0x42b   :  { %v2041_v50 = vadd.f32 %v4685_v61, %v5689_v27  ;;  %v2032_v6 = vpop.f32.mrb[93].mxu1 }
 0x42c   :  { %v2033_v37 = vadd.f32 %v2032_v6, %v5691_v55  ;;  %v4686_v62 = vpop.f32.mrb[94].mxu1 }
 0x42d   :  { %v2170_v9 = vadd.f32 %v2041_v50, %v1983_v49  ;;  %v2035_v10 = vpop.f32.mrb[95].mxu1 }
 0x42e   :  { %v2168_v18 = vadd.f32 %v2033_v37, %v1975_v46  ;;  %v2036_v21 = vadd.f32 %v2035_v10, %v5693_v52 }
 0x430   :  { %v2169_v0 = vadd.f32 %v2036_v21, %v1978_v1 }
 0x432   :  { %v4705_v22 = vpop.f32.mrb[104].mxu0 }
 0x433   :  { %v2099_v12 = vadd.f32 %v4705_v22, %v5695_v28  ;;  %v2090_v30 = vpop.f32.mrb[105].mxu0 }
 0x434   :  { %v2091_v31 = vadd.f32 %v2090_v30, %v5697_v40  ;;  %v4706_v19 = vpop.f32.mrb[106].mxu0  ;;  %v3976_v40 = vld [vmem:[%s6326_s8 + $0x1] ss:$0 sm:$0xff] }
 0x435   :  { %v2093_v34 = vpop.f32.mrb[107].mxu0 }
 0x436   :  { %v2094_v27 = vadd.f32 %v2093_v34, %v5699_v4 }
 0x44a   :  { %v4725_v42 = vpop.f32.mrb[96].mxu1 }
 0x44b   :  { %v2157_v55 = vadd.f32 %v4725_v42, %v5701_v51  ;;  %v2148_v43 = vpop.f32.mrb[97].mxu1 }
 0x44c   :  { %v2149_v48 = vadd.f32 %v2148_v43, %v5706_v11  ;;  %v4726_v60 = vpop.f32.mrb[98].mxu1 }
 0x44d   :  { %v2173_v63 = vadd.f32 %v2157_v55, %v2099_v12  ;;  %v2151_v52 = vpop.f32.mrb[99].mxu1  ;;  %v4003_v60 = vld [vmem:[%s6329_s4 + $0x1] sm:$0x1] }
 0x44e   :  { %v2171_v3 = vadd.f32 %v2149_v48, %v2091_v31  ;;  %v2152_v15 = vadd.f32 %v2151_v52, %v5714_v5  ;;  %v4875_v5 = vld [vmem:[%s6328_s5 + $0x8] ss:$20 sps:$4 sm:$0xff]   ;;  %v4006_v52 = vld [vmem:[%s6329_s4 + $0x3] sm:$0x1] }
 0x44f   :  { %v2179_v28 = vadd.f32 %v2173_v63, %v2170_v9 }
 0x450   :  { %v2177_v16 = vadd.f32 %v2171_v3, %v2168_v18  ;;  %v2172_v23 = vadd.f32 %v2152_v15, %v2094_v27 }
 0x451   :  { %v2182_v4 = vadd.f32 %v2179_v28, %v2176_v33 }
 0x452   :  { %v2180_v36 = vadd.f32 %v2177_v16, %v2174_v45  ;;  %v2178_v41 = vadd.f32 %v2172_v23, %v2169_v0  ;;  %v4009_v16 = vld [vmem:[%s6329_s4 + $0x5] sm:$0x1] }
 0x453   :  { %v2191_v51 = vadd.f32 %v3976_v40, %v2182_v4 }
 0x454   :  { %v2189_v59 = vadd.f32 %v3976_v40, %v2180_v36  ;;  %v2181_v2 = vadd.f32 %v2178_v41, %v2175_v39  ;;  %v4012_v41 = vld [vmem:[%s6329_s4 + $0x7] sm:$0x1] }
 0x455   :  { %v2194_v29 = vmax.f32 %v2191_v51, 0.0 }
 0x456   :  { %v2190_v11 = vadd.f32 %v3976_v40, %v2181_v2  ;;  %v2192_v54 = vmax.f32 %v2189_v59, 0.0  ;;  %v4014_v59 = vld [vmem:[%s6329_s4 + $0x8] sm:$0x1] }
 0x457   :  { %v2196_v14 = vpack.c.bf16 %v2194_v29, %v2194_v29 }
 0x458   :  { %v2193_v8 = vmax.f32 %v2190_v11, 0.0  ;;  %v2491_v11 = vld [vmem:[%s6329_s4] sm:$0x1] }
 0x45a   :  { %v2195_v47 = vpack.c.bf16 %v2193_v8, %v2192_v54  ;;  %v4005_v54 = vld [vmem:[%s6329_s4 + $0x2] sm:$0x1] }
 0x45c   :  { %3997 = vmatmul.mubr.msk.bf16.vlgmr.msra.gmra.mrb[108].mxu0 %vm132_vm0, %v2195_v47  ;;  %4735 = vmatprep.mubr.msk.bf16.mxu1 %vm132_vm0, %v2195_v47 }
 0x45d   :  { %2383 = vmatpush1.bf16.msra.mxu0 %v4875_v5  ;;  %4736 = vmatmul.mubr.msk.bf16.vlgmr.msra.gmra.mrb[100].mxu1 %vm132_vm0, %v2196_v14  ;;  %v4008_v5 = vld [vmem:[%s6329_s4 + $0x4] sm:$0x1] }
 0x45e   :  { %2384 = vmatprep.subr.bf16.mxu0 %v4880_v25  ;;  %2373 = vmatprep.mubr.bf16.mxu0 %v6386_v38  ;;  %v4011_v25 = vld [vmem:[%s6329_s4 + $0x6] sm:$0x1] }
 0x45f   :  { %4751 = vmatprep.mubr.msk.bf16.mxu1 %vm4926_vm2, %v4925_v32 }
 0x461   :  { %2385 = vmatpush1.bf16.msra.mxu0 %v4878_v7  ;;  %v2969_v7 = vld [vmem:[%s6330_s6 + $0x20] sm:$0xff] }
 0x462   :  { %2386 = vmatprep.subr.bf16.mxu0 %v4883_v13  ;;  %v2966_v13 = vld [vmem:[%s6330_s6 + $0x8] sm:$0xff] }
 0x464   :  { %3998 = vmatmul.mubr.msk.bf16.gmra.mrb[112].mxu0 %vm132_vm0, %v2196_v14 }
 0x465   :  { %2387 = vmatpush1.bf16.msra.mxu0 %v4881_v24  ;;  %2414 = vmatprep.mubr.bf16.mxu0 %v6386_v38 }
 0x466   :  { %2388 = vmatprep.subr.bf16.mxu0 %v4886_v20  ;;  %v2970_v20 = vld [vmem:[%s6330_s6 + $0x28] sm:$0xff] }
 0x469   :  { %2389 = vmatpush1.bf16.msra.mxu0 %v4884_v35 }
 0x46a   :  { %4739 = vmatprep.subr.bf16.mxu0 %v4925_v32 }
 0x46c   :  { %3999 = vmatmul.mubr.msk.bf16.vlgmr.msra.gmra.mrb[116].mxu0 %vm132_vm0, %v2195_v47 }
 0x46d   :  { %2424 = vmatprep.mubr.bf16.mxu0 %v6386_v38 }
 0x474   :  { %4000 = vmatmul.mubr.msk.bf16.gmra.mrb[120].mxu0 %vm132_vm0, %v2196_v14  ;;  %v2965_v14 = vld [vmem:[%s6330_s6] sm:$0xff] }
 0x475   :  { %4743 = vmatprep.mubr.msk.bf16.mxu0 %vm4926_vm2, %v4925_v32  ;;  %v4022_v24 = vcombine.high %v2965_v14, %v2969_v7  ;;  %v4021_v35 = vcombine.low %v2965_v14, %v2969_v7 }
 0x52f   :  { %v2365_v56 = vpop.f32.mrb[108].mxu0 }
 0x530   :  { %v2367_v53 = vpop.f32.mrb[109].mxu0  ;;  %v5805_v33 = vpop.f32.mrb[100].mxu1 }
 0x531   :  { %v2369_v45 = vpop.f32.mrb[110].mxu0  ;;  %v5807_v57 = vpop.f32.mrb[101].mxu1  ;;  %v2490_v4 = vpack.c.bf16 %v5805_v33, %v5805_v33  ;;  %v2977_v33 = vld [vmem:[%s6330_s6 + $0x60] sm:$0xff] }
 0x532   :  { %v5813_v39 = vpack.c.bf16 %v2369_v45, %v2365_v56  ;;  %v2371_v17 = vpop.f32.mrb[111].mxu0  ;;  %v4738_v49 = vpop.f32.mrb[102].mxu1  ;;  %v4024_v56 = vcombine.high %v2966_v13, %v2970_v20  ;;  %v2974_v45 = vld [vmem:[%s6330_s6 + $0x48] sm:$0xff] }
 0x533   :  { %v5815_v26 = vpack.c.bf16 %v2371_v17, %v2367_v53  ;;  %v5817_v46 = vpop.f32.mrb[103].mxu1  ;;  %v2726_v51 = vsel %vm2505_vm3, %v2490_v4, 0  ;;  %v2973_v53 = vld [vmem:[%s6330_s6 + $0x40] sm:$0xff] }
 0x534   :  { %v2485_v44 = vpack.c.bf16 %v5817_v46, %v5807_v57  ;;  %2496 = vrot.lane.b32.xlu0 %v5813_v39, %s4924_s3  ;;  %v4030_v57 = vcombine.high %v2973_v53, %v2977_v33  ;;  %v4029_v17 = vcombine.low %v2973_v53, %v2977_v33  ;;  %v2981_v46 = vld [vmem:[%s6330_s6 + $0x80] sm:$0xff] }
 0x537   :  { %v2375_v58 = vpop.f32.mrb[112].mxu0 }
 0x538   :  { %v5823_v1 = vpack.c.bf16 %v2375_v58, %v2375_v58  ;;  %2555 = vrot.lane.b32.xlu0 %v5815_v26, %s4924_s3  ;;  %v2377_v61 = vpop.f32.mrb[113].mxu0  ;;  %v2982_v58 = vld [vmem:[%s6330_s6 + $0x88] sm:$0xff] }
 0x539   :  { %v5827_v50 = vpack.c.bf16 %v2377_v61, %v2377_v61  ;;  %v2379_v6 = vpop.f32.mrb[114].mxu0  ;;  %v2986_v61 = vld [vmem:[%s6330_s6 + $0xa8] sm:$0xff] }
 0x53a   :  { %2498 = vrot.lane.b32.xlu1 %v5823_v1, %s4924_s3  ;;  %v2380_v37 = vpop.f32.mrb[115].mxu0  ;;  %v2772_v2 = vsel %vm2505_vm3, %v5823_v1, 0  ;;  %v4039_v6 = vcombine.low %v2982_v58, %v2986_v61 }
 0x53b   :  { %v2818_v29 = vsel %vm2505_vm3, %v5827_v50, 0  ;;  %v4040_v37 = vcombine.high %v2982_v58, %v2986_v61  ;;  %v4020_v61 = vld [vmem:[%s6326_s8 + $0x2] ss:$0 sm:$0xff] }
 0x53c   :  { %2557 = vrot.lane.b32.xlu0 %v5827_v50, %s4924_s3 }
 0x53f   :  { %v2416_v62 = vpop.f32.mrb[116].mxu0 }
 0x540   :  { %v2418_v9 = vpop.f32.mrb[117].mxu0 }
 0x541   :  { %v2420_v10 = vpop.f32.mrb[118].mxu0 }
 0x542   :  { %v5833_v18 = vpack.c.bf16 %v2420_v10, %v2416_v62  ;;  %v2422_v21 = vpop.f32.mrb[119].mxu0  ;;  %v2989_v62 = vld [vmem:[%s6330_s6 + $0xc0] sm:$0xff]  ;;  %v2990_v10 = vld [vmem:[%s6330_s6 + $0xc8] sm:$0xff] }
 0x543   :  { %v5835_v0 = vpack.c.bf16 %v2422_v21, %v2418_v9  ;;  %v2993_v9 = vld [vmem:[%s6330_s6 + $0xe0] sm:$0xff]  ;;  %v2994_v21 = vld [vmem:[%s6330_s6 + $0xe8] sm:$0xff] }
 0x544   :  { %2612 = vrot.lane.b32.xlu1 %v5833_v18, %s4924_s3 }
 0x545   :  { %2669 = vrot.lane.b32.xlu0 %v5835_v0, %s4924_s3 }
 0x547   :  { %v2426_v22 = vpop.f32.mrb[120].mxu0 }
 0x548   :  { %v5841_v12 = vpack.c.bf16 %v2426_v22, %v2426_v22  ;;  %v2428_v30 = vpop.f32.mrb[121].mxu0  ;;  %v4047_v22 = vcombine.low %v2990_v10, %v2994_v21 }
 0x549   :  { %v2430_v31 = vpop.f32.mrb[122].mxu0  ;;  %v5845_v34 = vpack.c.bf16 %v2428_v30, %v2428_v30  ;;  %v5990_v30 = vld [vmem:[%s6330_s6 + $0x10] sm:$0xff] }
 0x54a   :  { %2614 = vrot.lane.b32.xlu1 %v5841_v12, %s4924_s3  ;;  %v2431_v19 = vpop.f32.mrb[123].mxu0  ;;  %v2864_v8 = vsel %vm2505_vm3, %v5841_v12, 0  ;;  %v4048_v12 = vcombine.high %v2990_v10, %v2994_v21  ;;  %v5995_v31 = vld [vmem:[%s6330_s6 + $0x30] sm:$0xff]  ;;  %v2980_v10 = vld [vmem:[%s6330_s6 + $0x78] sm:$0xff] }
 0x54b   :  { %v2910_v47 = vsel %vm2505_vm3, %v5845_v34, 0  ;;  %v6000_v19 = vld [vmem:[%s6330_s6 + $0x18] sm:$0xff] }
 0x54e   :  { %2671 = vrot.lane.b32.xlu1 %v5845_v34, %s4924_s3  ;;  %v4026_v34 = vcombine.high %v5990_v30, %v5995_v31 }
 0x5a6   :  { %v2497_v27 = vpop.permute.xlu0 %2496 }
 0x5a7   :  { %4740 = vmatpush3.bf16.msra.mxu0 %v2497_v27  ;;  %v6007_v27 = vld [vmem:[%s6330_s6 + $0x38] sm:$0xff] }
 0x5a8   :  { %4741 = vmatprep.subr.bf16.mxu0 %v4925_v32 }
 0x5aa   :  { %v2556_v42 = vpop.permute.xlu0 %2555 }
 0x5ab   :  { %4748 = vmatpush3.bf16.msra.mxu1 %v2556_v42  ;;  %v4025_v42 = vcombine.low %v5990_v30, %v5995_v31  ;;  %v2992_v30 = vld [vmem:[%s6330_s6 + $0xd8] sm:$0xff] }
 0x5ac   :  { %v2499_v55 = vpop.permute.xlu1 %2498  ;;  %4749 = vmatprep.subr.bf16.mxu1 %v4925_v32  ;;  %v2996_v31 = vld [vmem:[%s6330_s6 + $0xf8] sm:$0xff] }
 0x5ad   :  { %v2507_v43 = vsel %vm2505_vm3, %v2499_v55, 0  ;;  %v4027_v55 = vcombine.low %v6000_v19, %v6007_v27 }
 0x5ae   :  { %4742 = vmatpush3.bf16.msra.mxu0 %v2507_v43  ;;  %v2558_v48 = vpop.permute.xlu0 %2557  ;;  %v4028_v43 = vcombine.high %v6000_v19, %v6007_v27 }
 0x5af   :  { %v2564_v63 = vsel %vm2505_vm3, %v2558_v48, 0  ;;  %4755 = vmatprep.subr.bf16.mxu0 %v4925_v32 }
 0x5b0   :  { %4750 = vmatpush3.bf16.msra.mxu1 %v2564_v63 }
 0x5b1   :  { %4744 = vmatmul.mubr.msk.bf16.vlgmr.msra.gmra.mrb[124].mxu0 %vm2501_vm4, %v4003_v60  ;;  %4763 = vmatprep.subr.bf16.mxu1 %v4925_v32 }
 0x5b2   :  { %4759 = vmatprep.mubr.msk.bf16.mxu0 %vm4926_vm2, %v4925_v32 }
 0x5b3   :  { %4752 = vmatmul.mubr.msk.bf16.vlgmr.msra.gmra.mrb[104].mxu1 %vm2501_vm4, %v4006_v52 }
 0x5b4   :  { %4767 = vmatprep.mubr.msk.bf16.mxu1 %vm4926_vm2, %v4925_v32 }
 0x5b6   :  { %v2613_v3 = vpop.permute.xlu1 %2612 }
 0x5b7   :  { %4756 = vmatpush3.bf16.msra.mxu0 %v2613_v3  ;;  %v2670_v15 = vpop.permute.xlu0 %2669 }
 0x5b8   :  { %4764 = vmatpush3.bf16.msra.mxu1 %v2670_v15  ;;  %4757 = vmatprep.subr.bf16.mxu0 %v4925_v32 }
 0x5b9   :  { %4765 = vmatprep.subr.bf16.mxu1 %v4925_v32 }
 0x5bc   :  { %v2615_v28 = vpop.permute.xlu1 %2614 }
 0x5bd   :  { %v2621_v40 = vsel %vm2505_vm3, %v2615_v28, 0 }
 0x5be   :  { %4758 = vmatpush3.bf16.msra.mxu0 %v2621_v40 }
 0x5bf   :  { %4771 = vmatprep.subr.bf16.mxu0 %v4925_v32 }
 0x5c0   :  { %v2672_v23 = vpop.permute.xlu1 %2671 }
 0x5c1   :  { %v2678_v36 = vsel %vm2505_vm3, %v2672_v23, 0  ;;  %4760 = vmatmul.mubr.msk.bf16.vlgmr.msra.gmra.mrb[128].mxu0 %vm2501_vm4, %v4009_v16 }
 0x5c2   :  { %4766 = vmatpush3.bf16.msra.mxu1 %v2678_v36  ;;  %4772 = vmatpush3.bf16.msra.mxu0 %v2485_v44  ;;  %v2985_v44 = vld [vmem:[%s6330_s6 + $0xa0] sm:$0xff] }
 0x5c3   :  { %4773 = vmatprep.subr.bf16.mxu0 %v4925_v32  ;;  %4779 = vmatprep.subr.bf16.mxu1 %v4925_v32  ;;  %v4038_v1 = vcombine.high %v2981_v46, %v2985_v44  ;;  %v4037_v50 = vcombine.low %v2981_v46, %v2985_v44 }
 0x5c4   :  { %4775 = vmatprep.mubr.msk.bf16.mxu0 %vm4926_vm2, %v4925_v32 }
 0x5c5   :  { %4768 = vmatmul.mubr.msk.bf16.vlgmr.msra.gmra.mrb[108].mxu1 %vm2501_vm4, %v4012_v41 }
 0x5c6   :  { %4774 = vmatpush3.bf16.msra.mxu0 %v2726_v51  ;;  %4780 = vmatpush3.bf16.msra.mxu1 %v5813_v39  ;;  %v2978_v39 = vld [vmem:[%s6330_s6 + $0x68] sm:$0xff] }
 0x5c7   :  { %4781 = vmatprep.subr.bf16.mxu1 %v4925_v32  ;;  %4787 = vmatprep.subr.bf16.mxu0 %v4925_v32  ;;  %v4031_v49 = vcombine.low %v2974_v45, %v2978_v39 }
 0x5c8   :  { %4783 = vmatprep.mubr.msk.bf16.mxu1 %vm4926_vm2, %v4925_v32 }
 0x5c9   :  { %4776 = vmatmul.mubr.msk.bf16.vlgmr.msra.gmra.mrb[132].mxu0 %vm2501_vm4, %v4014_v59 }
 0x5ca   :  { %4782 = vmatpush3.bf16.msra.mxu1 %v2772_v2  ;;  %4788 = vmatpush3.bf16.msra.mxu0 %v5815_v26  ;;  %v4032_v26 = vcombine.high %v2974_v45, %v2978_v39 }
 0x5cb   :  { %4789 = vmatprep.subr.bf16.mxu0 %v4925_v32  ;;  %4795 = vmatprep.subr.bf16.mxu1 %v4925_v32 }
 0x5cc   :  { %4791 = vmatprep.mubr.msk.bf16.mxu0 %vm4926_vm2, %v4925_v32 }
 0x5cd   :  { %4784 = vmatmul.mubr.msk.bf16.vlgmr.msra.gmra.mrb[112].mxu1 %vm2501_vm4, %v2491_v11 }
 0x5ce   :  { %4790 = vmatpush3.bf16.msra.mxu0 %v2818_v29  ;;  %4796 = vmatpush3.bf16.msra.mxu1 %v5833_v18  ;;  %v4046_v18 = vcombine.high %v2989_v62, %v2993_v9 }
 0x5cf   :  { %4797 = vmatprep.subr.bf16.mxu1 %v4925_v32  ;;  %4803 = vmatprep.subr.bf16.mxu0 %v4925_v32 }
 0x5d0   :  { %4799 = vmatprep.mubr.msk.bf16.mxu1 %vm4926_vm2, %v4925_v32 }
 0x5d1   :  { %4792 = vmatmul.mubr.msk.bf16.vlgmr.msra.gmra.mrb[136].mxu0 %vm2501_vm4, %v4005_v54 }
 0x5d2   :  { %4798 = vmatpush3.bf16.msra.mxu1 %v2864_v8  ;;  %4804 = vmatpush3.bf16.msra.mxu0 %v5835_v0  ;;  %v4045_v0 = vcombine.low %v2989_v62, %v2993_v9  ;;  %v2979_v62 = vld [vmem:[%s6330_s6 + $0x70] sm:$0xff]  ;;  %v2976_v9 = vld [vmem:[%s6330_s6 + $0x58] sm:$0xff] }
 0x5d3   :  { %4805 = vmatprep.subr.bf16.mxu0 %v4925_v32  ;;  %4807 = vmatprep.mubr.msk.bf16.mxu0 %vm4926_vm2, %v4925_v32  ;;  %v4023_v32 = vcombine.low %v2966_v13, %v2970_v20 }
 0x5d4   :  { %3201 = vmatprep.subr.bf16.mxu1 %v4022_v24 }
 0x5d5   :  { %4800 = vmatmul.mubr.msk.bf16.vlgmr.msra.gmra.mrb[116].mxu1 %vm2501_vm4, %v4008_v5 }
 0x5d6   :  { %4806 = vmatpush3.bf16.msra.mxu0 %v2910_v47  ;;  %3233 = vmatprep.mubr.bf16.mxu1 %v6386_v38 }
 0x5d7   :  { %3242 = vmatprep.subr.bf16.mxu0 %v4024_v56  ;;  %3202 = vmatpush1.bf16.msra.mxu1 %v4021_v35 }
 0x5d8   :  { %3203 = vmatprep.subr.bf16.mxu1 %v4030_v57 }
 0x5d9   :  { %4808 = vmatmul.mubr.msk.bf16.vlgmr.msra.gmra.mrb[140].mxu0 %vm2501_vm4, %v4011_v25 }
 0x5da   :  { %3274 = vmatprep.mubr.bf16.mxu0 %v6386_v38  ;;  %3243 = vmatpush1.bf16.msra.mxu0 %v4023_v32 }
 0x5db   :  { %3244 = vmatprep.subr.bf16.mxu0 %v4032_v26  ;;  %3204 = vmatpush1.bf16.msra.mxu1 %v4029_v17 }
 0x5dc   :  { %3205 = vmatprep.subr.bf16.mxu1 %v4038_v1 }
 0x5de   :  { %3245 = vmatpush1.bf16.msra.mxu0 %v4031_v49 }
 0x5df   :  { %3246 = vmatprep.subr.bf16.mxu0 %v4040_v37  ;;  %3206 = vmatpush1.bf16.msra.mxu1 %v4037_v50  ;;  %v2975_v37 = vld [vmem:[%s6330_s6 + $0x50] sm:$0xff] }
 0x5e0   :  { %3207 = vmatprep.subr.bf16.mxu1 %v4046_v18 }
 0x5e2   :  { %3247 = vmatpush1.bf16.msra.mxu0 %v4039_v6 }
 0x5e3   :  { %3248 = vmatprep.subr.bf16.mxu0 %v4048_v12  ;;  %3208 = vmatpush1.bf16.msra.mxu1 %v4045_v0  ;;  %v4034_v0 = vcombine.high %v2975_v37, %v2979_v62  ;;  %v2983_v12 = vld [vmem:[%s6330_s6 + $0x90] sm:$0xff] }
 0x5e4   :  { %3283 = vmatprep.subr.bf16.mxu1 %v4026_v34  ;;  %v2987_v34 = vld [vmem:[%s6330_s6 + $0xb0] sm:$0xff] }
 0x5e5   :  { %v4041_v19 = vcombine.low %v2983_v12, %v2987_v34 }
 0x5e6   :  { %3249 = vmatpush1.bf16.msra.mxu0 %v4047_v22  ;;  %v4036_v22 = vcombine.high %v2976_v9, %v2980_v10 }
 0x5e7   :  { %3324 = vmatprep.subr.bf16.mxu0 %v4028_v43  ;;  %v2984_v43 = vld [vmem:[%s6330_s6 + $0x98] sm:$0xff] }
 0x684   :  { %v2543_v48 = vpop.f32.mrb[124].mxu0 }
 0x685   :  { %v4745_v60 = vpop.f32.mrb[125].mxu0 }
 0x686   :  { %v2546_v63 = vpop.f32.mrb[126].mxu0  ;;  %v2600_v52 = vpop.f32.mrb[104].mxu1  ;;  %v4033_v60 = vcombine.low %v2975_v37, %v2979_v62 }
 0x687   :  { %v4746_v3 = vpop.f32.mrb[127].mxu0  ;;  %v4753_v15 = vpop.f32.mrb[105].mxu1  ;;  %v4035_v63 = vcombine.low %v2976_v9, %v2980_v10 }
 0x688   :  { %v2603_v28 = vpop.f32.mrb[106].mxu1  ;;  %v2991_v15 = vld [vmem:[%s6330_s6 + $0xd0] sm:$0xff] }
 0x689   :  { %v4754_v40 = vpop.f32.mrb[107].mxu1  ;;  %v2995_v28 = vld [vmem:[%s6330_s6 + $0xf0] sm:$0xff] }
 0x68a   :  { %v4049_v40 = vcombine.low %v2991_v15, %v2995_v28 }
 0x694   :  { %v2657_v16 = vpop.f32.mrb[128].mxu0 }
 0x695   :  { %v4761_v23 = vpop.f32.mrb[129].mxu0 }
 0x696   :  { %v2660_v4 = vpop.f32.mrb[130].mxu0  ;;  %v6067_v23 = vld [vmem:[%s6331_s7 + $0x40] sm:$0xff]  }
 0x697   :  { %v4762_v36 = vpop.f32.mrb[131].mxu0  ;;  %v6077_v4 = vld [vmem:[%s6331_s7] sm:$0xff]  }
 0x698   :  { %v2714_v41 = vpop.f32.mrb[108].mxu1  ;;  %v6082_v36 = vld [vmem:[%s6331_s7 + $0x80] sm:$0xff]  }
 0x699   :  { %v4769_v51 = vpop.f32.mrb[109].mxu1 }
 0x69a   :  { %v2717_v59 = vpop.f32.mrb[110].mxu1  ;;  %v6094_v51 = vld [vmem:[%s6331_s7 + $0xc8] sm:$0xff]  }
 0x69b   :  { %v4770_v2 = vpop.f32.mrb[111].mxu1  ;;  %v6103_v59 = vld [vmem:[%s6331_s7 + $0x8] sm:$0xff]  }
 0x69c   :  { %v2762_v11 = vpop.f32.mrb[132].mxu0  ;;  %v6108_v2 = vld [vmem:[%s6331_s7 + $0x88] sm:$0xff]  }
 0x69d   :  { %v4777_v29 = vpop.f32.mrb[133].mxu0 }
 0x69e   :  { %v2765_v54 = vpop.f32.mrb[134].mxu0  ;;  %v6120_v29 = vld [vmem:[%s6331_s7 + $0xd0] sm:$0xff]  }
 0x69f   :  { %v4778_v8 = vpop.f32.mrb[135].mxu0  ;;  %v6127_v54 = vld [vmem:[%s6331_s7 + $0x10] sm:$0xff]  }
 0x6a0   :  { %v2808_v5 = vpop.f32.mrb[112].mxu1  ;;  %v6132_v8 = vld [vmem:[%s6331_s7 + $0x90] sm:$0xff]  }
 0x6a1   :  { %v2809_v47 = vadd.f32 %v2808_v5, %v2543_v48  ;;  %v4785_v25 = vpop.f32.mrb[113].mxu1  ;;  %v2988_v48 = vld [vmem:[%s6330_s6 + $0xb8] sm:$0xff] }
 0x6a2   :  { %v2811_v14 = vpop.f32.mrb[114].mxu1  ;;  %v4044_v3 = vcombine.high %v2984_v43, %v2988_v48  ;;  %v4043_v27 = vcombine.low %v2984_v43, %v2988_v48  ;;  %v6139_v5 = vld [vmem:[%s6331_s7 + $0x58] sm:$0xff]  }
 0x6a3   :  { %v4786_v7 = vpop.f32.mrb[115].mxu1  ;;  %v6151_v25 = vld [vmem:[%s6331_s7 + $0x18] sm:$0xff]  }
 0x6a4   :  { %v2854_v13 = vpop.f32.mrb[136].mxu0  ;;  %v6156_v14 = vld [vmem:[%s6331_s7 + $0x98] sm:$0xff]   ;;  %v6163_v7 = vld [vmem:[%s6331_s7 + $0x60] sm:$0xff]  }
 0x6a5   :  { %v2855_v24 = vadd.f32 %v2854_v13, %v2600_v52  ;;  %v4793_v20 = vpop.f32.mrb[137].mxu0  ;;  %v4042_v52 = vcombine.high %v2983_v12, %v2987_v34  ;;  %v6168_v13 = vld [vmem:[%s6331_s7 + $0xe0] sm:$0xff]  }
 0x6a6   :  { %v2857_v35 = vpop.f32.mrb[138].mxu0  ;;  %v6180_v20 = vld [vmem:[%s6331_s7 + $0xa0] sm:$0xff]  }
 0x6a7   :  { %v2952_v32 = vadd.f32 %v2855_v24, %v2809_v47  ;;  %v4794_v56 = vpop.f32.mrb[139].mxu0  ;;  %v6144_v47 = vld [vmem:[%s6331_s7 + $0xd8] sm:$0xff]   ;;  %v6175_v24 = vld [vmem:[%s6331_s7 + $0x20] sm:$0xff]   ;;  %v6187_v35 = vld [vmem:[%s6331_s7 + $0x68] sm:$0xff]  }
 0x6a8   :  { %v2900_v53 = vpop.f32.mrb[116].mxu1  ;;  %v6199_v56 = vld [vmem:[%s6331_s7 + $0x28] sm:$0xff]  }
 0x6a9   :  { %v2901_v33 = vadd.f32 %v2900_v53, %v2657_v16  ;;  %v4801_v45 = vpop.f32.mrb[117].mxu1  ;;  %v4051_v16 = vcombine.low %v2992_v30, %v2996_v31  ;;  %v6204_v53 = vld [vmem:[%s6331_s7 + $0xa8] sm:$0xff]  }
 0x6aa   :  { %v2903_v57 = vpop.f32.mrb[118].mxu1  ;;  %v6218_v45 = vld [vmem:[%s6331_s7 + $0xf0] sm:$0xff]  }
 0x6ab   :  { %v4802_v39 = vpop.f32.mrb[119].mxu1  ;;  %v6223_v57 = vld [vmem:[%s6331_s7 + $0x30] sm:$0xff]  }
 0x6ac   :  { %v2946_v17 = vpop.f32.mrb[140].mxu0  ;;  %v6228_v39 = vld [vmem:[%s6331_s7 + $0xb0] sm:$0xff]  }
 0x6ad   :  { %v2947_v49 = vadd.f32 %v2946_v17, %v2714_v41  ;;  %v4809_v26 = vpop.f32.mrb[141].mxu0  ;;  %v6089_v41 = vld [vmem:[%s6331_s7 + $0x48] sm:$0xff]   ;;  %v6237_v17 = vld [vmem:[%s6331_s7 + $0x78] sm:$0xff]  }
 0x6ae   :  { %v2949_v46 = vpop.f32.mrb[142].mxu0  ;;  %v6247_v26 = vld [vmem:[%s6331_s7 + $0x38] sm:$0xff]  }
 0x6af   :  { %v2953_v44 = vadd.f32 %v2947_v49, %v2901_v33  ;;  %v4810_v58 = vpop.f32.mrb[143].mxu0  ;;  %v6213_v33 = vld [vmem:[%s6331_s7 + $0x70] sm:$0xff]   ;;  %v6242_v49 = vld [vmem:[%s6331_s7 + $0xf8] sm:$0xff]  }
 0x6b0   :  { %v6252_v46 = vld [vmem:[%s6331_s7 + $0xb8] sm:$0xff]  }
 0x6b1   :  { %v2954_v1 = vadd.f32 %v2953_v44, %v2952_v32  ;;  %v6192_v32 = vld [vmem:[%s6331_s7 + $0xe8] sm:$0xff]   ;;  %v2998_v44 = vlaneseq }
 0x6b3   :  { %v2955_v50 = vadd.f32 %v2954_v1, %v2762_v11  ;;  %v6115_v11 = vld [vmem:[%s6331_s7 + $0x50] sm:$0xff]   ;;  %v6261_v58 = vshrl.u32 %v2998_v44, 7 }
 0x6b5   :  { %v2962_v6 = vadd.f32 %v4020_v61, %v2955_v50  ;;  %v3000_v1 = vsub.s32 0, %v6261_v58  ;;  %v3008_v61 = vsub.s32 2, %v6261_v58  ;;  %v6268_v50 = vld [vmem:[%s6326_s8 + $0x3] sm:$0xff]  ;;  %v3012_v37 = vsub.s32 3, %v6261_v58 }
 0x6b7   :  { %v2963_v18 = vmax.f32 %v2962_v6, 0.0  ;;  %v3004_v6 = vsub.s32 1, %v6261_v58  ;;  %v3001_v62 = vrot.slane %v6268_v50, %v3000_v1  ;;  %v3009_v9 = vrot.slane %v6268_v50, %v3008_v61 }
 0x6b9   :  { %v2964_v21 = vpack.c.bf16 %v2963_v18, %v2963_v18  ;;  %v3005_v10 = vrot.slane %v6268_v50, %v3004_v6  ;;  %v3013_v18 = vrot.slane %v6268_v50, %v3012_v37 }
 0x6bb   :  { %4053 = vmatmul.mubr.msk.bf16.vlgmr.msra.gmra.mrb[120].mxu1 %vm132_vm0, %v2964_v21  ;;  %4054 = vmatmul.mubr.msk.bf16.vlgmr.msra.gmra.mrb[144].mxu0 %vm132_vm0, %v2964_v21 }
 0x6bc   :  { %3284 = vmatpush1.bf16.msra.mxu1 %v4025_v42  ;;  %3325 = vmatpush1.bf16.msra.mxu0 %v4027_v55  ;;  %v4050_v42 = vcombine.high %v2991_v15, %v2995_v28  ;;  %v4052_v55 = vcombine.high %v2992_v30, %v2996_v31 }
 0x6bd   :  { %3285 = vmatprep.subr.bf16.mxu1 %v4034_v0  ;;  %3326 = vmatprep.subr.bf16.mxu0 %v4036_v22 }
 0x6be   :  { %3315 = vmatprep.mubr.bf16.mxu1 %v6386_v38  ;;  %3356 = vmatprep.mubr.bf16.mxu0 %v6386_v38  ;;  %v6072_v38 = vld [vmem:[%s6331_s7 + $0xc0] sm:$0xff]  }
 0x6c0   :  { %3286 = vmatpush1.bf16.msra.mxu1 %v4033_v60  ;;  %3327 = vmatpush1.bf16.msra.mxu0 %v4035_v63 }
 0x6c1   :  { %3287 = vmatprep.subr.bf16.mxu1 %v4042_v52  ;;  %3328 = vmatprep.subr.bf16.mxu0 %v4044_v3 }
 0x6c4   :  { %3288 = vmatpush1.bf16.msra.mxu1 %v4041_v19  ;;  %3329 = vmatpush1.bf16.msra.mxu0 %v4043_v27 }
 0x6c5   :  { %3289 = vmatprep.subr.bf16.mxu1 %v4050_v42  ;;  %3330 = vmatprep.subr.bf16.mxu0 %v4052_v55 }
 0x6c8   :  { %3290 = vmatpush1.bf16.msra.mxu1 %v4049_v40  ;;  %3331 = vmatpush1.bf16.msra.mxu0 %v4051_v16  ;;  %v3020_v16 = vsub.s32 5, %v6261_v58 }
 0x6c9   :  { %4295 = vmatprep.subr.bf16.mxu1 %v6067_v23  ;;  %4317 = vmatprep.subr.bf16.mxu0 %v6072_v38 }
 0x6cb   :  { %4055 = vmatmul.mubr.msk.bf16.vlgmr.msra.gmra.mrb[124].mxu1 %vm132_vm0, %v2964_v21  ;;  %4056 = vmatmul.mubr.msk.bf16.vlgmr.msra.gmra.mrb[148].mxu0 %vm132_vm0, %v2964_v21 }
 0x6cc   :  { %4296 = vmatpush3.bf16.msra.mxu1 %v6077_v4  ;;  %4318 = vmatpush3.bf16.msra.mxu0 %v6082_v36 }
 0x6cd   :  { %4297 = vmatprep.subr.bf16.mxu1 %v6089_v41  ;;  %4319 = vmatprep.subr.bf16.mxu0 %v6094_v51 }
 0x6d0   :  { %4298 = vmatpush3.bf16.msra.mxu1 %v6103_v59  ;;  %4320 = vmatpush3.bf16.msra.mxu0 %v6108_v2 }
 0x6d1   :  { %4299 = vmatprep.subr.bf16.mxu1 %v6115_v11  ;;  %4321 = vmatprep.subr.bf16.mxu0 %v6120_v29 }
 0x6d4   :  { %4300 = vmatpush3.bf16.msra.mxu1 %v6127_v54  ;;  %4322 = vmatpush3.bf16.msra.mxu0 %v6132_v8 }
 0x6d5   :  { %4301 = vmatprep.subr.bf16.mxu1 %v6139_v5  ;;  %4323 = vmatprep.subr.bf16.mxu0 %v6144_v47 }
 0x6d8   :  { %4302 = vmatpush3.bf16.msra.mxu1 %v6151_v25  ;;  %4324 = vmatpush3.bf16.msra.mxu0 %v6156_v14 }
 0x6d9   :  { %4303 = vmatprep.subr.bf16.mxu1 %v6163_v7  ;;  %4325 = vmatprep.subr.bf16.mxu0 %v6168_v13 }
 0x6dc   :  { %4304 = vmatpush3.bf16.msra.mxu1 %v6175_v24  ;;  %4326 = vmatpush3.bf16.msra.mxu0 %v6180_v20 }
 0x6dd   :  { %4305 = vmatprep.subr.bf16.mxu1 %v6187_v35  ;;  %4327 = vmatprep.subr.bf16.mxu0 %v6192_v32 }
 0x6e0   :  { %4306 = vmatpush3.bf16.msra.mxu1 %v6199_v56  ;;  %4328 = vmatpush3.bf16.msra.mxu0 %v6204_v53 }
 0x6e1   :  { %4307 = vmatprep.subr.bf16.mxu1 %v6213_v33  ;;  %4329 = vmatprep.subr.bf16.mxu0 %v6218_v45 }
 0x6e4   :  { %4308 = vmatpush3.bf16.msra.mxu1 %v6223_v57  ;;  %4330 = vmatpush3.bf16.msra.mxu0 %v6228_v39 }
 0x6e5   :  { %4309 = vmatprep.subr.bf16.mxu1 %v6237_v17  ;;  %4331 = vmatprep.subr.bf16.mxu0 %v6242_v49 }
 0x6e8   :  { %4310 = vmatpush3.bf16.msra.mxu1 %v6247_v26  ;;  %4332 = vmatpush3.bf16.msra.mxu0 %v6252_v46 }
 0x6e9   :  { %4339 = vmatprep.subr.bf16.mxu1 %v6067_v23  ;;  %4361 = vmatprep.subr.bf16.mxu0 %v6072_v38  ;;  %v3028_v23 = vsub.s32 7, %v6261_v58  ;;  %v3021_v38 = vrot.slane %v6268_v50, %v3020_v16 }
 0x6eb   :  { %v3029_v1 = vrot.slane %v6268_v50, %v3028_v23 }
 0x78e   :  { %v3235_v21 = vpop.f32.mrb[120].mxu1  ;;  %v3276_v0 = vpop.f32.mrb[144].mxu0 }
 0x78f   :  { %v3236_v22 = vadd.f32 %v3235_v21, %v3001_v62  ;;  %v3277_v12 = vadd.f32 %v3276_v0, %v3009_v9  ;;  %v3237_v34 = vpop.f32.mrb[121].mxu1  ;;  %v3278_v43 = vpop.f32.mrb[145].mxu0 }
 0x790   :  { %v3238_v48 = vadd.f32 %v3237_v34, %v3005_v10  ;;  %v3279_v60 = vadd.f32 %v3278_v43, %v3013_v18  ;;  %v3239_v63 = vpop.f32.mrb[122].mxu1  ;;  %v3280_v52 = vpop.f32.mrb[146].mxu0  ;;  %v3016_v18 = vsub.s32 4, %v6261_v58 }
 0x791   :  { %v3365_v3 = vmax.f32 %v3236_v22, 0.0  ;;  %v3367_v15 = vmax.f32 %v3277_v12, 0.0  ;;  %v3240_v28 = vpop.f32.mrb[123].mxu1  ;;  %v3281_v30 = vpop.f32.mrb[147].mxu0  ;;  %v4089_v63 = vld [vmem:[%s6326_s8 + $0xb] ss:$0 sm:$0xff] }
 0x792   :  { %v3366_v31 = vmax.f32 %v3238_v48, 0.0  ;;  %v3368_v19 = vmax.f32 %v3279_v60, 0.0 }
 0x793   :  { %v3373_v55 = vpack.c.bf16 %v3365_v3, %v3365_v3  ;;  %v3375_v40 = vpack.c.bf16 %v3367_v15, %v3367_v15 }
 0x794   :  { %v3374_v27 = vpack.c.bf16 %v3366_v31, %v3366_v31  ;;  %v3376_v42 = vpack.c.bf16 %v3368_v19, %v3368_v19 }
 0x796   :  { %3669 = vmatprep.mubr.bf16.mxu1 %v3374_v27  ;;  %3709 = vmatprep.mubr.bf16.mxu0 %v3376_v42 }
 0x797   :  { %3670 = vmatmul.mubr.bf16.vlgmr.msra.gmra.mrb[128].mxu1 %v3373_v55  ;;  %3710 = vmatmul.mubr.bf16.vlgmr.msra.gmra.mrb[152].mxu0 %v3375_v40 }
 0x798   :  { %4340 = vmatpush3.bf16.msra.mxu1 %v6077_v4  ;;  %4362 = vmatpush3.bf16.msra.mxu0 %v6082_v36 }
 0x799   :  { %4341 = vmatprep.subr.bf16.mxu1 %v6089_v41  ;;  %4363 = vmatprep.subr.bf16.mxu0 %v6094_v51 }
 0x79c   :  { %4342 = vmatpush3.bf16.msra.mxu1 %v6103_v59  ;;  %4364 = vmatpush3.bf16.msra.mxu0 %v6108_v2 }
 0x79d   :  { %4343 = vmatprep.subr.bf16.mxu1 %v6115_v11  ;;  %4365 = vmatprep.subr.bf16.mxu0 %v6120_v29 }
 0x79e   :  { %v3317_v4 = vpop.f32.mrb[124].mxu1  ;;  %v3358_v36 = vpop.f32.mrb[148].mxu0 }
 0x79f   :  { %v3319_v61 = vpop.f32.mrb[125].mxu1  ;;  %v3360_v6 = vpop.f32.mrb[149].mxu0 }
 0x7a0   :  { %v3320_v37 = vadd.f32 %v3319_v61, %v3021_v38  ;;  %v3361_v41 = vadd.f32 %v3360_v6, %v3029_v1  ;;  %v3321_v62 = vpop.f32.mrb[126].mxu1  ;;  %v3362_v51 = vpop.f32.mrb[150].mxu0  ;;  %4344 = vmatpush3.bf16.msra.mxu1 %v6127_v54  ;;  %4366 = vmatpush3.bf16.msra.mxu0 %v6132_v8  ;;  %v3024_v54 = vsub.s32 6, %v6261_v58  ;;  %v3017_v8 = vrot.slane %v6268_v50, %v3016_v18 }
 0x7a1   :  { %v3322_v59 = vpop.f32.mrb[127].mxu1  ;;  %v3363_v2 = vpop.f32.mrb[151].mxu0  ;;  %4345 = vmatprep.subr.bf16.mxu1 %v6139_v5  ;;  %4367 = vmatprep.subr.bf16.mxu0 %v6144_v47 }
 0x7a2   :  { %v3370_v11 = vmax.f32 %v3320_v37, 0.0  ;;  %v3372_v29 = vmax.f32 %v3361_v41, 0.0  ;;  %v3025_v5 = vrot.slane %v6268_v50, %v3024_v54  ;;  %v3318_v47 = vadd.f32 %v3317_v4, %v3017_v8 }
 0x7a4   :  { %v3378_v9 = vpack.c.bf16 %v3370_v11, %v3370_v11  ;;  %v3380_v10 = vpack.c.bf16 %v3372_v29, %v3372_v29  ;;  %4346 = vmatpush3.bf16.msra.mxu1 %v6151_v25  ;;  %4368 = vmatpush3.bf16.msra.mxu0 %v6156_v14  ;;  %v3359_v25 = vadd.f32 %v3358_v36, %v3025_v5  ;;  %v3369_v14 = vmax.f32 %v3318_v47, 0.0 }
 0x7a5   :  { %4347 = vmatprep.subr.bf16.mxu1 %v6163_v7  ;;  %4369 = vmatprep.subr.bf16.mxu0 %v6168_v13 }
 0x7a6   :  { %3749 = vmatprep.mubr.bf16.mxu1 %v3378_v9  ;;  %3789 = vmatprep.mubr.bf16.mxu0 %v3380_v10  ;;  %v3371_v7 = vmax.f32 %v3359_v25, 0.0  ;;  %v3377_v13 = vpack.c.bf16 %v3369_v14, %v3369_v14 }
 0x7a8   :  { %4348 = vmatpush3.bf16.msra.mxu1 %v6175_v24  ;;  %4370 = vmatpush3.bf16.msra.mxu0 %v6180_v20  ;;  %v3379_v24 = vpack.c.bf16 %v3371_v7, %v3371_v7 }
 0x7a9   :  { %4349 = vmatprep.subr.bf16.mxu1 %v6187_v35  ;;  %4371 = vmatprep.subr.bf16.mxu0 %v6192_v32 }
 0x7ac   :  { %4350 = vmatpush3.bf16.msra.mxu1 %v6199_v56  ;;  %4372 = vmatpush3.bf16.msra.mxu0 %v6204_v53 }
 0x7ad   :  { %4351 = vmatprep.subr.bf16.mxu1 %v6213_v33  ;;  %4373 = vmatprep.subr.bf16.mxu0 %v6218_v45 }
 0x7b0   :  { %4352 = vmatpush3.bf16.msra.mxu1 %v6223_v57  ;;  %4374 = vmatpush3.bf16.msra.mxu0 %v6228_v39 }
 0x7b1   :  { %4353 = vmatprep.subr.bf16.mxu1 %v6237_v17  ;;  %4375 = vmatprep.subr.bf16.mxu0 %v6242_v49  ;;  %v3798_v49 = vand.u32 127, %v2998_v44 }
 0x7b3   :  { %vm3799_vm5 = vcmp.eq.s32.totalorder %v3798_v49, 0  ;;  %vm3808_vm6 = vcmp.ge.s32.totalorder %v3798_v49, 1  ;;  %vm3809_vm7 = vcmp.le.s32.totalorder %v3798_v49, 6 }
 0x7b4   :  { %4354 = vmatpush3.bf16.msra.mxu1 %v6247_v26  ;;  %4376 = vmatpush3.bf16.msra.mxu0 %v6252_v46  ;;  %vm3810_vm8 = vmand %vm3808_vm6, %vm3809_vm7 }
 0x7b7   :  { %3750 = vmatmul.mubr.bf16.vlgmr.msra.gmra.mrb[132].mxu1 %v3377_v13  ;;  %3790 = vmatmul.mubr.bf16.vlgmr.msra.gmra.mrb[156].mxu0 %v3379_v24 }
 0x86a   :  { %v4311_v20 = vpop.f32.mrb[128].mxu1  ;;  %v4333_v35 = vpop.f32.mrb[152].mxu0 }
 0x86b   :  { %v4312_v32 = vpop.f32.mrb[129].mxu1  ;;  %v4334_v56 = vpop.f32.mrb[153].mxu0 }
 0x86c   :  { %v4313_v53 = vadd.f32 %v4312_v32, %v4311_v20  ;;  %v4335_v33 = vadd.f32 %v4334_v56, %v4333_v35  ;;  %v4314_v45 = vpop.f32.mrb[130].mxu1  ;;  %v4336_v57 = vpop.f32.mrb[154].mxu0 }
 0x86d   :  { %v4315_v39 = vpop.f32.mrb[131].mxu1  ;;  %v4337_v17 = vpop.f32.mrb[155].mxu0 }
 0x86e   :  { %v3712_v58 = vadd.f32 %v4335_v33, %v4313_v53 }
 0x88a   :  { %v4355_v26 = vpop.f32.mrb[132].mxu1  ;;  %v4377_v50 = vpop.f32.mrb[156].mxu0 }
 0x88b   :  { %v4356_v46 = vpop.f32.mrb[133].mxu1  ;;  %v4378_v21 = vpop.f32.mrb[157].mxu0 }
 0x88c   :  { %v4357_v0 = vadd.f32 %v4356_v46, %v4355_v26  ;;  %v4379_v22 = vadd.f32 %v4378_v21, %v4377_v50  ;;  %v4358_v12 = vpop.f32.mrb[134].mxu1  ;;  %v4380_v34 = vpop.f32.mrb[158].mxu0 }
 0x88d   :  { %v4359_v43 = vpop.f32.mrb[135].mxu1  ;;  %v4381_v48 = vpop.f32.mrb[159].mxu0 }
 0x88e   :  { %v3792_v60 = vadd.f32 %v4379_v22, %v4357_v0 }
 0x890   :  { %v3800_v44 = vsel %vm3799_vm5, %v3712_v58, %v3792_v60 }
 0x891   :  { %v3807_v52 = vadd.f32 %v4089_v63, %v3800_v44 }
 0x893   :  { %v3811_v3 = vsel %vm3810_vm8, %v3807_v52, -1e+30 }
 0x894   :  { %v3813_v15 = vsel %vm3812_vm9, %v3811_v3, -inf }
 0x895   :  { %3814 = vmax.xlane.f32.xlu0 %v3813_v15 }
 0x922   :  { %v3815_v28 = vpop.xlane.xlu0 %3814 }
 0x923   :  { %v3816_v30 = vsub.f32 %v3811_v3, %v3815_v28 }
 0x925   :  { %v3817_v31 = vmul.f32 1.442695, %v3816_v30 }
 0x927   :  { %4919 = vpow2.f32 %v3817_v31 }
 0x931   :  { %v4920_v19 = vpop.eup %4919 }
 0x932   :  { %v3819_v27 = vsel %vm3812_vm9, %v4920_v19, 0.0 }
 0x933   :  { %3820 = vadd.xlane.f32.xlu1 %v3819_v27 }
 0x9c0   :  { %v3821_v42 = vpop.xlane.xlu1 %3820 }
 0x9c1   :  { %4921 = vrcp.f32 %v3821_v42 }
 0x9cb   :  { %v4922_v55 = vpop.eup %4921 }
 0x9cc   :  { %v3823_v40 = vmul.f32 %v4922_v55, %v4920_v19 }
 0x9ce   :  { %v3824_v16 = vsel %vm3799_vm5, %v3807_v52, %v3823_v40 }
 0x9cf   :  { %3825 = vst [vmem:[%s6332_s9] sm:$0x3] %v3824_v16 }

</bundles_post_ra>
